<compile_context>
chip_gen: v7x
topology: tpu7x:2x2x1
jax: 0.10.0
libtpu: 0.0.40
codegen_flags: <defaults>
</compile_context>

<pallas_src>
import functools
import math

import jax
import jax.numpy as jnp
from jax import lax
from jax.experimental import pallas as pl
from jax.experimental.pallas import tpu as pltpu


def _attention_block_kernel(
    x_ref,                      # (M, E)   M = TB * S rows of this batch block
    wqkv_ref, bqkv_ref,         # (E, 3E), (1, 3E)
    wo_ref, bo_ref,             # (E, E),  (1, E)
    g1_ref, be1_ref,            # (1, E)   LayerNorm1 gamma / beta
    g2_ref, be2_ref,            # (1, E)   LayerNorm2 gamma / beta
    w1_ref, b1_ref,             # (E, Hd), (1, Hd)
    w2_ref, b2_ref,             # (Hd, E), (1, E)
    o_ref,                      # (M, E)
    ctx_ref,                    # VMEM scratch (M, E) f32 — per-head contexts
    *, num_heads, seq_len, batch_block, matmul_dtype,
):
    md = matmul_dtype
    x = x_ref[...].astype(jnp.float32)            # [M, E] keep residuals in f32
    M, E = x.shape
    head_dim = E // num_heads
    scale = 1.0 / math.sqrt(head_dim)
    eps = 1e-5

    def layer_norm(v, g, b):
        mu = jnp.mean(v, axis=-1, keepdims=True)
        c = v - mu
        var = jnp.mean(c * c, axis=-1, keepdims=True)
        return c * lax.rsqrt(var + eps) * g + b

    # ---- sublayer 1: pre-norm multi-head self-attention + residual ----
    xn = layer_norm(x, g1_ref[...], be1_ref[...])
    # Single fused QKV projection: [M, E] x [E, 3E] -> [M, 3E], f32 accumulation.
    qkv = jnp.dot(xn.astype(md), wqkv_ref[...],
                  preferred_element_type=jnp.float32) + bqkv_ref[...]

    # Per-(batch, head) score/softmax/context; results land in ctx_ref so each
    # head's [S,S] temporaries die immediately (bounded live ranges).
    for b in range(batch_block):                      # static: batch_block is small
        r0 = b * seq_len
        qkv_b = qkv[r0:r0 + seq_len]                  # [S, 3E]
        for h in range(num_heads):                    # static unroll, small H
            c0 = h * head_dim
            q = qkv_b[:, c0:c0 + head_dim] * scale    # fold 1/sqrt(Dh) into q
            k = qkv_b[:, E + c0:E + c0 + head_dim]
            v = qkv_b[:, 2 * E + c0:2 * E + c0 + head_dim]
            s = lax.dot_general(q.astype(md), k.astype(md),
                                (((1,), (1,)), ((), ())),
                                preferred_element_type=jnp.float32)    # [S, S]
            s = s - jnp.max(s, axis=-1, keepdims=True)
            p = jnp.exp(s)
            p = p * pl.reciprocal(jnp.sum(p, axis=-1, keepdims=True), approx=True)
            ctx = jnp.dot(p.astype(md), v.astype(md),
                          preferred_element_type=jnp.float32)          # [S, Dh]
            ctx_ref[r0:r0 + seq_len, c0:c0 + head_dim] = ctx

    # Single fused output projection: [M, E] x [E, E] (K = E, not Dh).
    attn = jnp.dot(ctx_ref[...].astype(md), wo_ref[...],
                   preferred_element_type=jnp.float32) + bo_ref[...]
    # TODO(synk): dropout1/dropout2 are identity here (inference mode); a training
    # variant would draw masks with pltpu.prng_seed / pltpu.prng_random_bits.
    x1 = x + attn

    # ---- sublayer 2: pre-norm MLP (fc1 -> relu -> fc2) + residual ----
    xn2 = layer_norm(x1, g2_ref[...], be2_ref[...])
    hdn = jnp.dot(xn2.astype(md), w1_ref[...],
                  preferred_element_type=jnp.float32) + b1_ref[...]
    hdn = jnp.maximum(hdn, 0.0)
    mlp = jnp.dot(hdn.astype(md), w2_ref[...],
                  preferred_element_type=jnp.float32) + b2_ref[...]

    o_ref[...] = (x1 + mlp).astype(o_ref.dtype)


def attention_block(x, params, num_heads, *, matmul_dtype=None, batch_block=None):
    """x: [S, B, E]; params are matmul-ready (y = x @ W + b). Returns [S, B, E]."""
    S, B, E = x.shape
    Hd = params["w1"].shape[1]
    assert E % num_heads == 0

    md = jnp.dtype(x.dtype if matmul_dtype is None else matmul_dtype)

    # Choose how many batch elements each grid step processes so the token-level
    # matmuls see M = TB*S >= ~256 rows, capped so per-step VMEM stays friendly.
    if batch_block is None:
        tb = max(1, min(B, max(1, 256 // max(S, 1))))
        while B % tb != 0:
            tb -= 1

        def act_bytes(t):
            m = t * S
            return 4 * m * (6 * E + 3 * E + Hd)        # rough f32 working set

        while tb > 1 and act_bytes(tb) > 48 * 1024 * 1024:
            tb -= 1
            while B % tb != 0:
                tb -= 1
        batch_block = tb
    TB = batch_block
    assert B % TB == 0
    M = TB * S

    # Flatten to [B*S, E] host-side so every grid block is a lane-dense 2-D slab
    # (E contiguous last dim) and per-batch attention slices are plain row slices.
    # (Keeping the native [S,B,E] layout in the BlockSpec is possible but would
    # require 3-D contractions / in-kernel relayouts; layout plumbing stays here.)
    x2d = jnp.transpose(x, (1, 0, 2)).reshape(B * S, E)

    f32 = jnp.float32
    wqkv = params["wqkv"].astype(md)                    # (E, 3E)
    bqkv = params["bqkv"].reshape(1, 3 * E).astype(f32)
    wo = params["wo"].astype(md)                        # (E, E)
    bo = params["bo"].reshape(1, E).astype(f32)
    g1 = params["gamma1"].reshape(1, E).astype(f32)
    be1 = params["beta1"].reshape(1, E).astype(f32)
    g2 = params["gamma2"].reshape(1, E).astype(f32)
    be2 = params["beta2"].reshape(1, E).astype(f32)
    w1 = params["w1"].astype(md)                        # (E, Hd)
    b1 = params["b1"].reshape(1, Hd).astype(f32)
    w2 = params["w2"].astype(md)                        # (Hd, E)
    b2 = params["b2"].reshape(1, E).astype(f32)

    def const_spec(shape):
        return pl.BlockSpec(shape, lambda i, n=len(shape): (0,) * n)

    weight_bytes = int((wqkv.size + wo.size + w1.size + w2.size) * md.itemsize
                       + (bqkv.size + bo.size + g1.size + be1.size + g2.size
                          + be2.size + b1.size + b2.size) * 4)
    act_block_bytes = int(M * E * jnp.dtype(x.dtype).itemsize)
    f32_work_bytes = int(4 * M * (8 * E + 3 * E + Hd))
    vmem_limit = 2 * weight_bytes + 4 * act_block_bytes + f32_work_bytes + (16 << 20)
    vmem_limit = int(max(32 << 20, min(vmem_limit, 100 << 20)))

    flops = B * (6 * S * E * E            # fused QKV projection
                 + 4 * S * S * E          # scores + context over all heads
                 + 2 * S * E * E          # output projection
                 + 4 * S * E * Hd)        # MLP
    transcendentals = B * (num_heads * S * S + 4 * S)
    bytes_accessed = 2 * B * S * E * int(jnp.dtype(x.dtype).itemsize) + weight_bytes

    out2d = pl.pallas_call(
        functools.partial(_attention_block_kernel,
                          num_heads=num_heads, seq_len=S,
                          batch_block=TB, matmul_dtype=md),
        out_shape=jax.ShapeDtypeStruct((B * S, E), x.dtype),
        grid_spec=pltpu.PrefetchScalarGridSpec(
            num_scalar_prefetch=0,
            grid=(B // TB,),
            in_specs=[
                pl.BlockSpec((M, E), lambda i: (i, 0)),
                const_spec((E, 3 * E)), const_spec((1, 3 * E)),
                const_spec((E, E)), const_spec((1, E)),
                const_spec((1, E)), const_spec((1, E)),
                const_spec((1, E)), const_spec((1, E)),
                const_spec((E, Hd)), const_spec((1, Hd)),
                const_spec((Hd, E)), const_spec((1, E)),
            ],
            out_specs=pl.BlockSpec((M, E), lambda i: (i, 0)),
            scratch_shapes=[pltpu.VMEM((M, E), jnp.float32)],
        ),
        compiler_params=pltpu.CompilerParams(
            dimension_semantics=("parallel",),
            vmem_limit_bytes=vmem_limit,
        ),
        cost_estimate=pl.CostEstimate(
            flops=flops, transcendentals=transcendentals,
            bytes_accessed=bytes_accessed),
    )(x2d, wqkv, bqkv, wo, bo, g1, be1, g2, be2, w1, b1, w2, b2)

    return jnp.transpose(out2d.reshape(B, S, E), (1, 0, 2))     # back to [S, B, E]


def attention_block_ref(x, params, num_heads):
    """Pure-JAX f32 reference matching the PyTorch module (dropout = identity)."""
    S, B, E = x.shape
    Dh = E // num_heads

    def ln(v, g, b):
        mu = v.mean(-1, keepdims=True)
        var = ((v - mu) ** 2).mean(-1, keepdims=True)
        return (v - mu) / jnp.sqrt(var + 1e-5) * g + b

    xn = ln(x, params["gamma1"], params["beta1"])                # [S, B, E]
    proj = xn @ params["wqkv"] + params["bqkv"]                  # [S, B, 3E]
    q, k, v = jnp.split(proj, 3, axis=-1)

    def split_heads(t):                                          # -> [B, H, S, Dh]
        return t.reshape(S, B, num_heads, Dh).transpose(1, 2, 0, 3)

    qh, kh, vh = map(split_heads, (q, k, v))
    s = jnp.einsum("bhqd,bhkd->bhqk", qh, kh) / jnp.sqrt(jnp.float32(Dh))
    p = jax.nn.softmax(s, axis=-1)
    ctx = jnp.einsum("bhqk,bhkd->bhqd", p, vh)                   # [B, H, S, Dh]
    ctx = ctx.transpose(2, 0, 1, 3).reshape(S, B, E)
    attn = ctx @ params["wo"] + params["bo"]
    x1 = x + attn
    xn2 = ln(x1, params["gamma2"], params["beta2"])
    h1 = jax.nn.relu(xn2 @ params["w1"] + params["b1"])
    return x1 + (h1 @ params["w2"] + params["b2"])


if __name__ == "__main__":
    # Small deterministic config consistent with the module.
    seq, batch, embed_dim, num_heads, hidden_dim = 8, 4, 32, 4, 64

    key = jax.random.PRNGKey(0)
    keys = jax.random.split(key, 13)

    def rnd(k, shape, scale=0.05):
        return scale * jax.random.normal(k, shape, jnp.float32)

    x = jax.random.normal(keys[0], (seq, batch, embed_dim), jnp.float32)
    params = {
        # matmul-ready layouts (transpose of the PyTorch nn.Linear weights)
        "wqkv": rnd(keys[1], (embed_dim, 3 * embed_dim)),
        "bqkv": rnd(keys[2], (3 * embed_dim,), 0.01),
        "wo": rnd(keys[3], (embed_dim, embed_dim)),
        "bo": rnd(keys[4], (embed_dim,), 0.01),
        "gamma1": 1.0 + rnd(keys[5], (embed_dim,), 0.01),
        "beta1": rnd(keys[6], (embed_dim,), 0.01),
        "gamma2": 1.0 + rnd(keys[7], (embed_dim,), 0.01),
        "beta2": rnd(keys[8], (embed_dim,), 0.01),
        "w1": rnd(keys[9], (embed_dim, hidden_dim)),
        "b1": rnd(keys[10], (hidden_dim,), 0.01),
        "w2": rnd(keys[11], (hidden_dim, embed_dim)),
        "b2": rnd(keys[12], (embed_dim,), 0.01),
    }

    ref = attention_block_ref(x, params, num_heads)

    # f32 matmul-operand path (default), multi-batch block per grid step.
    out = jax.block_until_ready(attention_block(x, params, num_heads))
    assert out.shape == (seq, batch, embed_dim)
    err = float(jnp.max(jnp.abs(out - ref)))
    # approx reciprocal in the softmax denominator -> slightly looser tolerance
    assert err < 2e-3, f"f32 path max_abs_err={err}"

    # One batch per step (grid > 1) to exercise the index maps / pipelining.
    out_g = jax.block_until_ready(
        attention_block(x, params, num_heads, batch_block=1))
    err_g = float(jnp.max(jnp.abs(out_g - ref)))
    assert err_g < 2e-3, f"grid path max_abs_err={err_g}"

    # bf16 MXU-operand path (weights pre-cast, activations cast at the dots).
    out_bf = jax.block_until_ready(
        attention_block(x, params, num_heads, matmul_dtype=jnp.bfloat16))
    err_bf = float(jnp.max(jnp.abs(out_bf - ref)))
    assert err_bf < 5e-2, f"bf16 path max_abs_err={err_bf}"

    print("KERNEL_OK")
</pallas_src>

<mosaic_0001>
module attributes {stable_mosaic.version = 11 : i64} {
  func.func @_attention_block_kernel(%arg0: i32, %arg1: memref<32x32xf32, #tpu.memory_space<vmem>>, %arg2: memref<32x96xf32, #tpu.memory_space<vmem>>, %arg3: memref<1x96xf32, #tpu.memory_space<vmem>>, %arg4: memref<32x32xf32, #tpu.memory_space<vmem>>, %arg5: memref<1x32xf32, #tpu.memory_space<vmem>>, %arg6: memref<1x32xf32, #tpu.memory_space<vmem>>, %arg7: memref<1x32xf32, #tpu.memory_space<vmem>>, %arg8: memref<1x32xf32, #tpu.memory_space<vmem>>, %arg9: memref<1x32xf32, #tpu.memory_space<vmem>>, %arg10: memref<32x64xf32, #tpu.memory_space<vmem>>, %arg11: memref<1x64xf32, #tpu.memory_space<vmem>>, %arg12: memref<64x32xf32, #tpu.memory_space<vmem>>, %arg13: memref<1x32xf32, #tpu.memory_space<vmem>>, %arg14: memref<32x32xf32, #tpu.memory_space<vmem>>, %arg15: memref<32x32xf32, #tpu.memory_space<vmem>>) attributes {dimension_semantics = [#tpu.dimension_semantics<parallel>], iteration_bounds = array<i64: 1>, scalar_prefetch = 0 : i64, scratch_operands = 1 : i64, tpu.core_type = #tpu.core_type<tc>, window_params = [{transform_indices = @transform_0, window_bounds = array<i64: 32, 32>}, {pipeline_mode = #tpu.pipeline_mode<synchronous>, transform_indices = @transform_1, window_bounds = array<i64: 32, 96>}, {pipeline_mode = #tpu.pipeline_mode<synchronous>, transform_indices = @transform_2, window_bounds = array<i64: 1, 96>}, {pipeline_mode = #tpu.pipeline_mode<synchronous>, transform_indices = @transform_3, window_bounds = array<i64: 32, 32>}, {pipeline_mode = #tpu.pipeline_mode<synchronous>, transform_indices = @transform_4, window_bounds = array<i64: 1, 32>}, {pipeline_mode = #tpu.pipeline_mode<synchronous>, transform_indices = @transform_5, window_bounds = array<i64: 1, 32>}, {pipeline_mode = #tpu.pipeline_mode<synchronous>, transform_indices = @transform_6, window_bounds = array<i64: 1, 32>}, {pipeline_mode = #tpu.pipeline_mode<synchronous>, transform_indices = @transform_7, window_bounds = array<i64: 1, 32>}, {pipeline_mode = #tpu.pipeline_mode<synchronous>, transform_indices = @transform_8, window_bounds = array<i64: 1, 32>}, {pipeline_mode = #tpu.pipeline_mode<synchronous>, transform_indices = @transform_9, window_bounds = array<i64: 32, 64>}, {pipeline_mode = #tpu.pipeline_mode<synchronous>, transform_indices = @transform_10, window_bounds = array<i64: 1, 64>}, {pipeline_mode = #tpu.pipeline_mode<synchronous>, transform_indices = @transform_11, window_bounds = array<i64: 64, 32>}, {pipeline_mode = #tpu.pipeline_mode<synchronous>, transform_indices = @transform_12, window_bounds = array<i64: 1, 32>}, {transform_indices = @transform_13, window_bounds = array<i64: 32, 32>}]} {
    %c0 = arith.constant 0 : index
    %c0_0 = arith.constant 0 : index
    %0 = vector.load %arg1[%c0, %c0_0] : memref<32x32xf32, #tpu.memory_space<vmem>>, vector<32x32xf32>
    %c0_1 = arith.constant 0 : index
    %c0_2 = arith.constant 0 : index
    %1 = vector.load %arg6[%c0_1, %c0_2] : memref<1x32xf32, #tpu.memory_space<vmem>>, vector<1x32xf32>
    %c0_3 = arith.constant 0 : index
    %c0_4 = arith.constant 0 : index
    %2 = vector.load %arg7[%c0_3, %c0_4] : memref<1x32xf32, #tpu.memory_space<vmem>>, vector<1x32xf32>
    %cst = arith.constant dense<0.000000e+00> : vector<32xf32>
    %3 = vector.multi_reduction <add>, %0, %cst [1] : vector<32x32xf32> to vector<32xf32>
    %4 = vector.shape_cast %3 : vector<32xf32> to vector<32x1xf32>
    %cst_5 = arith.constant 3.200000e+01 : f32
    %5 = vector.broadcast %cst_5 : f32 to vector<32x1xf32>
    %6 = arith.divf %4, %5 : vector<32x1xf32>
    %7 = vector.broadcast %6 : vector<32x1xf32> to vector<32x32xf32>
    %8 = arith.subf %0, %7 : vector<32x32xf32>
    %9 = arith.mulf %8, %8 : vector<32x32xf32>
    %cst_6 = arith.constant dense<0.000000e+00> : vector<32xf32>
    %10 = vector.multi_reduction <add>, %9, %cst_6 [1] : vector<32x32xf32> to vector<32xf32>
    %11 = vector.shape_cast %10 : vector<32xf32> to vector<32x1xf32>
    %cst_7 = arith.constant 3.200000e+01 : f32
    %12 = vector.broadcast %cst_7 : f32 to vector<32x1xf32>
    %13 = arith.divf %11, %12 : vector<32x1xf32>
    %cst_8 = arith.constant 9.99999974E-6 : f32
    %14 = vector.broadcast %cst_8 : f32 to vector<32x1xf32>
    %15 = arith.addf %13, %14 : vector<32x1xf32>
    %16 = math.rsqrt %15 : vector<32x1xf32>
    %17 = vector.broadcast %16 : vector<32x1xf32> to vector<32x32xf32>
    %18 = arith.mulf %8, %17 : vector<32x32xf32>
    %19 = vector.broadcast %1 : vector<1x32xf32> to vector<32x32xf32>
    %20 = arith.mulf %18, %19 : vector<32x32xf32>
    %21 = vector.broadcast %2 : vector<1x32xf32> to vector<32x32xf32>
    %22 = arith.addf %20, %21 : vector<32x32xf32>
    %c0_9 = arith.constant 0 : index
    %c0_10 = arith.constant 0 : index
    %23 = vector.load %arg2[%c0_9, %c0_10] : memref<32x96xf32, #tpu.memory_space<vmem>>, vector<32x96xf32>
    %cst_11 = arith.constant dense<0.000000e+00> : vector<32x96xf32>
    %24 = tpu.matmul %22, %23, %cst_11 {dimension_numbers = #tpu.dot_dimension_numbers<[1], [0], [0], [1], [0, 0, 1, 1], [], []>} : vector<32x32xf32>, vector<32x96xf32>, vector<32x96xf32> -> vector<32x96xf32>
    %c0_12 = arith.constant 0 : index
    %c0_13 = arith.constant 0 : index
    %25 = vector.load %arg3[%c0_12, %c0_13] : memref<1x96xf32, #tpu.memory_space<vmem>>, vector<1x96xf32>
    %26 = vector.broadcast %25 : vector<1x96xf32> to vector<32x96xf32>
    %27 = arith.addf %24, %26 : vector<32x96xf32>
    %28 = vector.extract_strided_slice %27 {offsets = [0, 0], sizes = [8, 96], strides = [1, 1]} : vector<32x96xf32> to vector<8x96xf32>
    %29 = vector.extract_strided_slice %28 {offsets = [0, 0], sizes = [8, 8], strides = [1, 1]} : vector<8x96xf32> to vector<8x8xf32>
    %cst_14 = arith.constant 0.353553385 : f32
    %30 = vector.broadcast %cst_14 : f32 to vector<8x8xf32>
    %31 = arith.mulf %29, %30 : vector<8x8xf32>
    %32 = vector.extract_strided_slice %28 {offsets = [0, 32], sizes = [8, 8], strides = [1, 1]} : vector<8x96xf32> to vector<8x8xf32>
    %33 = vector.extract_strided_slice %28 {offsets = [0, 64], sizes = [8, 8], strides = [1, 1]} : vector<8x96xf32> to vector<8x8xf32>
    %cst_15 = arith.constant dense<0.000000e+00> : vector<8x8xf32>
    %34 = tpu.matmul %31, %32, %cst_15 {dimension_numbers = #tpu.dot_dimension_numbers<[1], [1], [0], [0], [0, 0, 1, 0], [], []>} : vector<8x8xf32>, vector<8x8xf32>, vector<8x8xf32> -> vector<8x8xf32>
    %cst_16 = arith.constant dense<0xFF800000> : vector<8xf32>
    %35 = vector.multi_reduction <maximumf>, %34, %cst_16 [1] : vector<8x8xf32> to vector<8xf32>
    %36 = vector.shape_cast %35 : vector<8xf32> to vector<8x1xf32>
    %37 = vector.broadcast %36 : vector<8x1xf32> to vector<8x8xf32>
    %38 = arith.subf %34, %37 : vector<8x8xf32>
    %39 = math.exp %38 : vector<8x8xf32>
    %cst_17 = arith.constant dense<0.000000e+00> : vector<8xf32>
    %40 = vector.multi_reduction <add>, %39, %cst_17 [1] : vector<8x8xf32> to vector<8xf32>
    %41 = vector.shape_cast %40 : vector<8xf32> to vector<8x1xf32>
    %42 = tpu.reciprocal %41 {approx = true} : vector<8x1xf32> -> vector<8x1xf32>
    %43 = vector.broadcast %42 : vector<8x1xf32> to vector<8x8xf32>
    %44 = arith.mulf %39, %43 : vector<8x8xf32>
    %cst_18 = arith.constant dense<0.000000e+00> : vector<8x8xf32>
    %45 = tpu.matmul %44, %33, %cst_18 {dimension_numbers = #tpu.dot_dimension_numbers<[1], [0], [0], [1], [0, 0, 1, 1], [], []>} : vector<8x8xf32>, vector<8x8xf32>, vector<8x8xf32> -> vector<8x8xf32>
    %c0_19 = arith.constant 0 : index
    %c0_20 = arith.constant 0 : index
    %46 = vector.load %arg15[%c0_19, %c0_20] : memref<32x32xf32, #tpu.memory_space<vmem>>, vector<8x8xf32>
    tpu.vector_store %arg15[%c0_19, %c0_20], %45 {strides = array<i32>} : memref<32x32xf32, #tpu.memory_space<vmem>>, vector<8x8xf32>,
    %47 = vector.extract_strided_slice %28 {offsets = [0, 8], sizes = [8, 8], strides = [1, 1]} : vector<8x96xf32> to vector<8x8xf32>
    %cst_21 = arith.constant 0.353553385 : f32
    %48 = vector.broadcast %cst_21 : f32 to vector<8x8xf32>
    %49 = arith.mulf %47, %48 : vector<8x8xf32>
    %50 = vector.extract_strided_slice %28 {offsets = [0, 40], sizes = [8, 8], strides = [1, 1]} : vector<8x96xf32> to vector<8x8xf32>
    %51 = vector.extract_strided_slice %28 {offsets = [0, 72], sizes = [8, 8], strides = [1, 1]} : vector<8x96xf32> to vector<8x8xf32>
    %cst_22 = arith.constant dense<0.000000e+00> : vector<8x8xf32>
    %52 = tpu.matmul %49, %50, %cst_22 {dimension_numbers = #tpu.dot_dimension_numbers<[1], [1], [0], [0], [0, 0, 1, 0], [], []>} : vector<8x8xf32>, vector<8x8xf32>, vector<8x8xf32> -> vector<8x8xf32>
    %cst_23 = arith.constant dense<0xFF800000> : vector<8xf32>
    %53 = vector.multi_reduction <maximumf>, %52, %cst_23 [1] : vector<8x8xf32> to vector<8xf32>
    %54 = vector.shape_cast %53 : vector<8xf32> to vector<8x1xf32>
    %55 = vector.broadcast %54 : vector<8x1xf32> to vector<8x8xf32>
    %56 = arith.subf %52, %55 : vector<8x8xf32>
    %57 = math.exp %56 : vector<8x8xf32>
    %cst_24 = arith.constant dense<0.000000e+00> : vector<8xf32>
    %58 = vector.multi_reduction <add>, %57, %cst_24 [1] : vector<8x8xf32> to vector<8xf32>
    %59 = vector.shape_cast %58 : vector<8xf32> to vector<8x1xf32>
    %60 = tpu.reciprocal %59 {approx = true} : vector<8x1xf32> -> vector<8x1xf32>
    %61 = vector.broadcast %60 : vector<8x1xf32> to vector<8x8xf32>
    %62 = arith.mulf %57, %61 : vector<8x8xf32>
    %cst_25 = arith.constant dense<0.000000e+00> : vector<8x8xf32>
    %63 = tpu.matmul %62, %51, %cst_25 {dimension_numbers = #tpu.dot_dimension_numbers<[1], [0], [0], [1], [0, 0, 1, 1], [], []>} : vector<8x8xf32>, vector<8x8xf32>, vector<8x8xf32> -> vector<8x8xf32>
    %c0_26 = arith.constant 0 : index
    %c8 = arith.constant 8 : index
    %64 = vector.load %arg15[%c0_26, %c8] : memref<32x32xf32, #tpu.memory_space<vmem>>, vector<8x8xf32>
    tpu.vector_store %arg15[%c0_26, %c8], %63 {strides = array<i32>} : memref<32x32xf32, #tpu.memory_space<vmem>>, vector<8x8xf32>,
    %65 = vector.extract_strided_slice %28 {offsets = [0, 16], sizes = [8, 8], strides = [1, 1]} : vector<8x96xf32> to vector<8x8xf32>
    %cst_27 = arith.constant 0.353553385 : f32
    %66 = vector.broadcast %cst_27 : f32 to vector<8x8xf32>
    %67 = arith.mulf %65, %66 : vector<8x8xf32>
    %68 = vector.extract_strided_slice %28 {offsets = [0, 48], sizes = [8, 8], strides = [1, 1]} : vector<8x96xf32> to vector<8x8xf32>
    %69 = vector.extract_strided_slice %28 {offsets = [0, 80], sizes = [8, 8], strides = [1, 1]} : vector<8x96xf32> to vector<8x8xf32>
    %cst_28 = arith.constant dense<0.000000e+00> : vector<8x8xf32>
    %70 = tpu.matmul %67, %68, %cst_28 {dimension_numbers = #tpu.dot_dimension_numbers<[1], [1], [0], [0], [0, 0, 1, 0], [], []>} : vector<8x8xf32>, vector<8x8xf32>, vector<8x8xf32> -> vector<8x8xf32>
    %cst_29 = arith.constant dense<0xFF800000> : vector<8xf32>
    %71 = vector.multi_reduction <maximumf>, %70, %cst_29 [1] : vector<8x8xf32> to vector<8xf32>
    %72 = vector.shape_cast %71 : vector<8xf32> to vector<8x1xf32>
    %73 = vector.broadcast %72 : vector<8x1xf32> to vector<8x8xf32>
    %74 = arith.subf %70, %73 : vector<8x8xf32>
    %75 = math.exp %74 : vector<8x8xf32>
    %cst_30 = arith.constant dense<0.000000e+00> : vector<8xf32>
    %76 = vector.multi_reduction <add>, %75, %cst_30 [1] : vector<8x8xf32> to vector<8xf32>
    %77 = vector.shape_cast %76 : vector<8xf32> to vector<8x1xf32>
    %78 = tpu.reciprocal %77 {approx = true} : vector<8x1xf32> -> vector<8x1xf32>
    %79 = vector.broadcast %78 : vector<8x1xf32> to vector<8x8xf32>
    %80 = arith.mulf %75, %79 : vector<8x8xf32>
    %cst_31 = arith.constant dense<0.000000e+00> : vector<8x8xf32>
    %81 = tpu.matmul %80, %69, %cst_31 {dimension_numbers = #tpu.dot_dimension_numbers<[1], [0], [0], [1], [0, 0, 1, 1], [], []>} : vector<8x8xf32>, vector<8x8xf32>, vector<8x8xf32> -> vector<8x8xf32>
    %c0_32 = arith.constant 0 : index
    %c16 = arith.constant 16 : index
    %82 = vector.load %arg15[%c0_32, %c16] : memref<32x32xf32, #tpu.memory_space<vmem>>, vector<8x8xf32>
    tpu.vector_store %arg15[%c0_32, %c16], %81 {strides = array<i32>} : memref<32x32xf32, #tpu.memory_space<vmem>>, vector<8x8xf32>,
    %83 = vector.extract_strided_slice %28 {offsets = [0, 24], sizes = [8, 8], strides = [1, 1]} : vector<8x96xf32> to vector<8x8xf32>
    %cst_33 = arith.constant 0.353553385 : f32
    %84 = vector.broadcast %cst_33 : f32 to vector<8x8xf32>
    %85 = arith.mulf %83, %84 : vector<8x8xf32>
    %86 = vector.extract_strided_slice %28 {offsets = [0, 56], sizes = [8, 8], strides = [1, 1]} : vector<8x96xf32> to vector<8x8xf32>
    %87 = vector.extract_strided_slice %28 {offsets = [0, 88], sizes = [8, 8], strides = [1, 1]} : vector<8x96xf32> to vector<8x8xf32>
    %cst_34 = arith.constant dense<0.000000e+00> : vector<8x8xf32>
    %88 = tpu.matmul %85, %86, %cst_34 {dimension_numbers = #tpu.dot_dimension_numbers<[1], [1], [0], [0], [0, 0, 1, 0], [], []>} : vector<8x8xf32>, vector<8x8xf32>, vector<8x8xf32> -> vector<8x8xf32>
    %cst_35 = arith.constant dense<0xFF800000> : vector<8xf32>
    %89 = vector.multi_reduction <maximumf>, %88, %cst_35 [1] : vector<8x8xf32> to vector<8xf32>
    %90 = vector.shape_cast %89 : vector<8xf32> to vector<8x1xf32>
    %91 = vector.broadcast %90 : vector<8x1xf32> to vector<8x8xf32>
    %92 = arith.subf %88, %91 : vector<8x8xf32>
    %93 = math.exp %92 : vector<8x8xf32>
    %cst_36 = arith.constant dense<0.000000e+00> : vector<8xf32>
    %94 = vector.multi_reduction <add>, %93, %cst_36 [1] : vector<8x8xf32> to vector<8xf32>
    %95 = vector.shape_cast %94 : vector<8xf32> to vector<8x1xf32>
    %96 = tpu.reciprocal %95 {approx = true} : vector<8x1xf32> -> vector<8x1xf32>
    %97 = vector.broadcast %96 : vector<8x1xf32> to vector<8x8xf32>
    %98 = arith.mulf %93, %97 : vector<8x8xf32>
    %cst_37 = arith.constant dense<0.000000e+00> : vector<8x8xf32>
    %99 = tpu.matmul %98, %87, %cst_37 {dimension_numbers = #tpu.dot_dimension_numbers<[1], [0], [0], [1], [0, 0, 1, 1], [], []>} : vector<8x8xf32>, vector<8x8xf32>, vector<8x8xf32> -> vector<8x8xf32>
    %c0_38 = arith.constant 0 : index
    %c24 = arith.constant 24 : index
    %100 = vector.load %arg15[%c0_38, %c24] : memref<32x32xf32, #tpu.memory_space<vmem>>, vector<8x8xf32>
    tpu.vector_store %arg15[%c0_38, %c24], %99 {strides = array<i32>} : memref<32x32xf32, #tpu.memory_space<vmem>>, vector<8x8xf32>,
    %101 = vector.extract_strided_slice %27 {offsets = [8, 0], sizes = [8, 96], strides = [1, 1]} : vector<32x96xf32> to vector<8x96xf32>
    %102 = vector.extract_strided_slice %101 {offsets = [0, 0], sizes = [8, 8], strides = [1, 1]} : vector<8x96xf32> to vector<8x8xf32>
    %cst_39 = arith.constant 0.353553385 : f32
    %103 = vector.broadcast %cst_39 : f32 to vector<8x8xf32>
    %104 = arith.mulf %102, %103 : vector<8x8xf32>
    %105 = vector.extract_strided_slice %101 {offsets = [0, 32], sizes = [8, 8], strides = [1, 1]} : vector<8x96xf32> to vector<8x8xf32>
    %106 = vector.extract_strided_slice %101 {offsets = [0, 64], sizes = [8, 8], strides = [1, 1]} : vector<8x96xf32> to vector<8x8xf32>
    %cst_40 = arith.constant dense<0.000000e+00> : vector<8x8xf32>
    %107 = tpu.matmul %104, %105, %cst_40 {dimension_numbers = #tpu.dot_dimension_numbers<[1], [1], [0], [0], [0, 0, 1, 0], [], []>} : vector<8x8xf32>, vector<8x8xf32>, vector<8x8xf32> -> vector<8x8xf32>
    %cst_41 = arith.constant dense<0xFF800000> : vector<8xf32>
    %108 = vector.multi_reduction <maximumf>, %107, %cst_41 [1] : vector<8x8xf32> to vector<8xf32>
    %109 = vector.shape_cast %108 : vector<8xf32> to vector<8x1xf32>
    %110 = vector.broadcast %109 : vector<8x1xf32> to vector<8x8xf32>
    %111 = arith.subf %107, %110 : vector<8x8xf32>
    %112 = math.exp %111 : vector<8x8xf32>
    %cst_42 = arith.constant dense<0.000000e+00> : vector<8xf32>
    %113 = vector.multi_reduction <add>, %112, %cst_42 [1] : vector<8x8xf32> to vector<8xf32>
    %114 = vector.shape_cast %113 : vector<8xf32> to vector<8x1xf32>
    %115 = tpu.reciprocal %114 {approx = true} : vector<8x1xf32> -> vector<8x1xf32>
    %116 = vector.broadcast %115 : vector<8x1xf32> to vector<8x8xf32>
    %117 = arith.mulf %112, %116 : vector<8x8xf32>
    %cst_43 = arith.constant dense<0.000000e+00> : vector<8x8xf32>
    %118 = tpu.matmul %117, %106, %cst_43 {dimension_numbers = #tpu.dot_dimension_numbers<[1], [0], [0], [1], [0, 0, 1, 1], [], []>} : vector<8x8xf32>, vector<8x8xf32>, vector<8x8xf32> -> vector<8x8xf32>
    %c8_44 = arith.constant 8 : index
    %c0_45 = arith.constant 0 : index
    %119 = vector.load %arg15[%c8_44, %c0_45] : memref<32x32xf32, #tpu.memory_space<vmem>>, vector<8x8xf32>
    tpu.vector_store %arg15[%c8_44, %c0_45], %118 {strides = array<i32>} : memref<32x32xf32, #tpu.memory_space<vmem>>, vector<8x8xf32>,
    %120 = vector.extract_strided_slice %101 {offsets = [0, 8], sizes = [8, 8], strides = [1, 1]} : vector<8x96xf32> to vector<8x8xf32>
    %cst_46 = arith.constant 0.353553385 : f32
    %121 = vector.broadcast %cst_46 : f32 to vector<8x8xf32>
    %122 = arith.mulf %120, %121 : vector<8x8xf32>
    %123 = vector.extract_strided_slice %101 {offsets = [0, 40], sizes = [8, 8], strides = [1, 1]} : vector<8x96xf32> to vector<8x8xf32>
    %124 = vector.extract_strided_slice %101 {offsets = [0, 72], sizes = [8, 8], strides = [1, 1]} : vector<8x96xf32> to vector<8x8xf32>
    %cst_47 = arith.constant dense<0.000000e+00> : vector<8x8xf32>
    %125 = tpu.matmul %122, %123, %cst_47 {dimension_numbers = #tpu.dot_dimension_numbers<[1], [1], [0], [0], [0, 0, 1, 0], [], []>} : vector<8x8xf32>, vector<8x8xf32>, vector<8x8xf32> -> vector<8x8xf32>
    %cst_48 = arith.constant dense<0xFF800000> : vector<8xf32>
    %126 = vector.multi_reduction <maximumf>, %125, %cst_48 [1] : vector<8x8xf32> to vector<8xf32>
    %127 = vector.shape_cast %126 : vector<8xf32> to vector<8x1xf32>
    %128 = vector.broadcast %127 : vector<8x1xf32> to vector<8x8xf32>
    %129 = arith.subf %125, %128 : vector<8x8xf32>
    %130 = math.exp %129 : vector<8x8xf32>
    %cst_49 = arith.constant dense<0.000000e+00> : vector<8xf32>
    %131 = vector.multi_reduction <add>, %130, %cst_49 [1] : vector<8x8xf32> to vector<8xf32>
    %132 = vector.shape_cast %131 : vector<8xf32> to vector<8x1xf32>
    %133 = tpu.reciprocal %132 {approx = true} : vector<8x1xf32> -> vector<8x1xf32>
    %134 = vector.broadcast %133 : vector<8x1xf32> to vector<8x8xf32>
    %135 = arith.mulf %130, %134 : vector<8x8xf32>
    %cst_50 = arith.constant dense<0.000000e+00> : vector<8x8xf32>
    %136 = tpu.matmul %135, %124, %cst_50 {dimension_numbers = #tpu.dot_dimension_numbers<[1], [0], [0], [1], [0, 0, 1, 1], [], []>} : vector<8x8xf32>, vector<8x8xf32>, vector<8x8xf32> -> vector<8x8xf32>
    %c8_51 = arith.constant 8 : index
    %c8_52 = arith.constant 8 : index
    %137 = vector.load %arg15[%c8_51, %c8_52] : memref<32x32xf32, #tpu.memory_space<vmem>>, vector<8x8xf32>
    tpu.vector_store %arg15[%c8_51, %c8_52], %136 {strides = array<i32>} : memref<32x32xf32, #tpu.memory_space<vmem>>, vector<8x8xf32>,
    %138 = vector.extract_strided_slice %101 {offsets = [0, 16], sizes = [8, 8], strides = [1, 1]} : vector<8x96xf32> to vector<8x8xf32>
    %cst_53 = arith.constant 0.353553385 : f32
    %139 = vector.broadcast %cst_53 : f32 to vector<8x8xf32>
    %140 = arith.mulf %138, %139 : vector<8x8xf32>
    %141 = vector.extract_strided_slice %101 {offsets = [0, 48], sizes = [8, 8], strides = [1, 1]} : vector<8x96xf32> to vector<8x8xf32>
    %142 = vector.extract_strided_slice %101 {offsets = [0, 80], sizes = [8, 8], strides = [1, 1]} : vector<8x96xf32> to vector<8x8xf32>
    %cst_54 = arith.constant dense<0.000000e+00> : vector<8x8xf32>
    %143 = tpu.matmul %140, %141, %cst_54 {dimension_numbers = #tpu.dot_dimension_numbers<[1], [1], [0], [0], [0, 0, 1, 0], [], []>} : vector<8x8xf32>, vector<8x8xf32>, vector<8x8xf32> -> vector<8x8xf32>
    %cst_55 = arith.constant dense<0xFF800000> : vector<8xf32>
    %144 = vector.multi_reduction <maximumf>, %143, %cst_55 [1] : vector<8x8xf32> to vector<8xf32>
    %145 = vector.shape_cast %144 : vector<8xf32> to vector<8x1xf32>
    %146 = vector.broadcast %145 : vector<8x1xf32> to vector<8x8xf32>
    %147 = arith.subf %143, %146 : vector<8x8xf32>
    %148 = math.exp %147 : vector<8x8xf32>
    %cst_56 = arith.constant dense<0.000000e+00> : vector<8xf32>
    %149 = vector.multi_reduction <add>, %148, %cst_56 [1] : vector<8x8xf32> to vector<8xf32>
    %150 = vector.shape_cast %149 : vector<8xf32> to vector<8x1xf32>
    %151 = tpu.reciprocal %150 {approx = true} : vector<8x1xf32> -> vector<8x1xf32>
    %152 = vector.broadcast %151 : vector<8x1xf32> to vector<8x8xf32>
    %153 = arith.mulf %148, %152 : vector<8x8xf32>
    %cst_57 = arith.constant dense<0.000000e+00> : vector<8x8xf32>
    %154 = tpu.matmul %153, %142, %cst_57 {dimension_numbers = #tpu.dot_dimension_numbers<[1], [0], [0], [1], [0, 0, 1, 1], [], []>} : vector<8x8xf32>, vector<8x8xf32>, vector<8x8xf32> -> vector<8x8xf32>
    %c8_58 = arith.constant 8 : index
    %c16_59 = arith.constant 16 : index
    %155 = vector.load %arg15[%c8_58, %c16_59] : memref<32x32xf32, #tpu.memory_space<vmem>>, vector<8x8xf32>
    tpu.vector_store %arg15[%c8_58, %c16_59], %154 {strides = array<i32>} : memref<32x32xf32, #tpu.memory_space<vmem>>, vector<8x8xf32>,
    %156 = vector.extract_strided_slice %101 {offsets = [0, 24], sizes = [8, 8], strides = [1, 1]} : vector<8x96xf32> to vector<8x8xf32>
    %cst_60 = arith.constant 0.353553385 : f32
    %157 = vector.broadcast %cst_60 : f32 to vector<8x8xf32>
    %158 = arith.mulf %156, %157 : vector<8x8xf32>
    %159 = vector.extract_strided_slice %101 {offsets = [0, 56], sizes = [8, 8], strides = [1, 1]} : vector<8x96xf32> to vector<8x8xf32>
    %160 = vector.extract_strided_slice %101 {offsets = [0, 88], sizes = [8, 8], strides = [1, 1]} : vector<8x96xf32> to vector<8x8xf32>
    %cst_61 = arith.constant dense<0.000000e+00> : vector<8x8xf32>
    %161 = tpu.matmul %158, %159, %cst_61 {dimension_numbers = #tpu.dot_dimension_numbers<[1], [1], [0], [0], [0, 0, 1, 0], [], []>} : vector<8x8xf32>, vector<8x8xf32>, vector<8x8xf32> -> vector<8x8xf32>
    %cst_62 = arith.constant dense<0xFF800000> : vector<8xf32>
    %162 = vector.multi_reduction <maximumf>, %161, %cst_62 [1] : vector<8x8xf32> to vector<8xf32>
    %163 = vector.shape_cast %162 : vector<8xf32> to vector<8x1xf32>
    %164 = vector.broadcast %163 : vector<8x1xf32> to vector<8x8xf32>
    %165 = arith.subf %161, %164 : vector<8x8xf32>
    %166 = math.exp %165 : vector<8x8xf32>
    %cst_63 = arith.constant dense<0.000000e+00> : vector<8xf32>
    %167 = vector.multi_reduction <add>, %166, %cst_63 [1] : vector<8x8xf32> to vector<8xf32>
    %168 = vector.shape_cast %167 : vector<8xf32> to vector<8x1xf32>
    %169 = tpu.reciprocal %168 {approx = true} : vector<8x1xf32> -> vector<8x1xf32>
    %170 = vector.broadcast %169 : vector<8x1xf32> to vector<8x8xf32>
    %171 = arith.mulf %166, %170 : vector<8x8xf32>
    %cst_64 = arith.constant dense<0.000000e+00> : vector<8x8xf32>
    %172 = tpu.matmul %171, %160, %cst_64 {dimension_numbers = #tpu.dot_dimension_numbers<[1], [0], [0], [1], [0, 0, 1, 1], [], []>} : vector<8x8xf32>, vector<8x8xf32>, vector<8x8xf32> -> vector<8x8xf32>
    %c8_65 = arith.constant 8 : index
    %c24_66 = arith.constant 24 : index
    %173 = vector.load %arg15[%c8_65, %c24_66] : memref<32x32xf32, #tpu.memory_space<vmem>>, vector<8x8xf32>
    tpu.vector_store %arg15[%c8_65, %c24_66], %172 {strides = array<i32>} : memref<32x32xf32, #tpu.memory_space<vmem>>, vector<8x8xf32>,
    %174 = vector.extract_strided_slice %27 {offsets = [16, 0], sizes = [8, 96], strides = [1, 1]} : vector<32x96xf32> to vector<8x96xf32>
    %175 = vector.extract_strided_slice %174 {offsets = [0, 0], sizes = [8, 8], strides = [1, 1]} : vector<8x96xf32> to vector<8x8xf32>
    %cst_67 = arith.constant 0.353553385 : f32
    %176 = vector.broadcast %cst_67 : f32 to vector<8x8xf32>
    %177 = arith.mulf %175, %176 : vector<8x8xf32>
    %178 = vector.extract_strided_slice %174 {offsets = [0, 32], sizes = [8, 8], strides = [1, 1]} : vector<8x96xf32> to vector<8x8xf32>
    %179 = vector.extract_strided_slice %174 {offsets = [0, 64], sizes = [8, 8], strides = [1, 1]} : vector<8x96xf32> to vector<8x8xf32>
    %cst_68 = arith.constant dense<0.000000e+00> : vector<8x8xf32>
    %180 = tpu.matmul %177, %178, %cst_68 {dimension_numbers = #tpu.dot_dimension_numbers<[1], [1], [0], [0], [0, 0, 1, 0], [], []>} : vector<8x8xf32>, vector<8x8xf32>, vector<8x8xf32> -> vector<8x8xf32>
    %cst_69 = arith.constant dense<0xFF800000> : vector<8xf32>
    %181 = vector.multi_reduction <maximumf>, %180, %cst_69 [1] : vector<8x8xf32> to vector<8xf32>
    %182 = vector.shape_cast %181 : vector<8xf32> to vector<8x1xf32>
    %183 = vector.broadcast %182 : vector<8x1xf32> to vector<8x8xf32>
    %184 = arith.subf %180, %183 : vector<8x8xf32>
    %185 = math.exp %184 : vector<8x8xf32>
    %cst_70 = arith.constant dense<0.000000e+00> : vector<8xf32>
    %186 = vector.multi_reduction <add>, %185, %cst_70 [1] : vector<8x8xf32> to vector<8xf32>
    %187 = vector.shape_cast %186 : vector<8xf32> to vector<8x1xf32>
    %188 = tpu.reciprocal %187 {approx = true} : vector<8x1xf32> -> vector<8x1xf32>
    %189 = vector.broadcast %188 : vector<8x1xf32> to vector<8x8xf32>
    %190 = arith.mulf %185, %189 : vector<8x8xf32>
    %cst_71 = arith.constant dense<0.000000e+00> : vector<8x8xf32>
    %191 = tpu.matmul %190, %179, %cst_71 {dimension_numbers = #tpu.dot_dimension_numbers<[1], [0], [0], [1], [0, 0, 1, 1], [], []>} : vector<8x8xf32>, vector<8x8xf32>, vector<8x8xf32> -> vector<8x8xf32>
    %c16_72 = arith.constant 16 : index
    %c0_73 = arith.constant 0 : index
    %192 = vector.load %arg15[%c16_72, %c0_73] : memref<32x32xf32, #tpu.memory_space<vmem>>, vector<8x8xf32>
    tpu.vector_store %arg15[%c16_72, %c0_73], %191 {strides = array<i32>} : memref<32x32xf32, #tpu.memory_space<vmem>>, vector<8x8xf32>,
    %193 = vector.extract_strided_slice %174 {offsets = [0, 8], sizes = [8, 8], strides = [1, 1]} : vector<8x96xf32> to vector<8x8xf32>
    %cst_74 = arith.constant 0.353553385 : f32
    %194 = vector.broadcast %cst_74 : f32 to vector<8x8xf32>
    %195 = arith.mulf %193, %194 : vector<8x8xf32>
    %196 = vector.extract_strided_slice %174 {offsets = [0, 40], sizes = [8, 8], strides = [1, 1]} : vector<8x96xf32> to vector<8x8xf32>
    %197 = vector.extract_strided_slice %174 {offsets = [0, 72], sizes = [8, 8], strides = [1, 1]} : vector<8x96xf32> to vector<8x8xf32>
    %cst_75 = arith.constant dense<0.000000e+00> : vector<8x8xf32>
    %198 = tpu.matmul %195, %196, %cst_75 {dimension_numbers = #tpu.dot_dimension_numbers<[1], [1], [0], [0], [0, 0, 1, 0], [], []>} : vector<8x8xf32>, vector<8x8xf32>, vector<8x8xf32> -> vector<8x8xf32>
    %cst_76 = arith.constant dense<0xFF800000> : vector<8xf32>
    %199 = vector.multi_reduction <maximumf>, %198, %cst_76 [1] : vector<8x8xf32> to vector<8xf32>
    %200 = vector.shape_cast %199 : vector<8xf32> to vector<8x1xf32>
    %201 = vector.broadcast %200 : vector<8x1xf32> to vector<8x8xf32>
    %202 = arith.subf %198, %201 : vector<8x8xf32>
    %203 = math.exp %202 : vector<8x8xf32>
    %cst_77 = arith.constant dense<0.000000e+00> : vector<8xf32>
    %204 = vector.multi_reduction <add>, %203, %cst_77 [1] : vector<8x8xf32> to vector<8xf32>
    %205 = vector.shape_cast %204 : vector<8xf32> to vector<8x1xf32>
    %206 = tpu.reciprocal %205 {approx = true} : vector<8x1xf32> -> vector<8x1xf32>
    %207 = vector.broadcast %206 : vector<8x1xf32> to vector<8x8xf32>
    %208 = arith.mulf %203, %207 : vector<8x8xf32>
    %cst_78 = arith.constant dense<0.000000e+00> : vector<8x8xf32>
    %209 = tpu.matmul %208, %197, %cst_78 {dimension_numbers = #tpu.dot_dimension_numbers<[1], [0], [0], [1], [0, 0, 1, 1], [], []>} : vector<8x8xf32>, vector<8x8xf32>, vector<8x8xf32> -> vector<8x8xf32>
    %c16_79 = arith.constant 16 : index
    %c8_80 = arith.constant 8 : index
    %210 = vector.load %arg15[%c16_79, %c8_80] : memref<32x32xf32, #tpu.memory_space<vmem>>, vector<8x8xf32>
    tpu.vector_store %arg15[%c16_79, %c8_80], %209 {strides = array<i32>} : memref<32x32xf32, #tpu.memory_space<vmem>>, vector<8x8xf32>,
    %211 = vector.extract_strided_slice %174 {offsets = [0, 16], sizes = [8, 8], strides = [1, 1]} : vector<8x96xf32> to vector<8x8xf32>
    %cst_81 = arith.constant 0.353553385 : f32
    %212 = vector.broadcast %cst_81 : f32 to vector<8x8xf32>
    %213 = arith.mulf %211, %212 : vector<8x8xf32>
    %214 = vector.extract_strided_slice %174 {offsets = [0, 48], sizes = [8, 8], strides = [1, 1]} : vector<8x96xf32> to vector<8x8xf32>
    %215 = vector.extract_strided_slice %174 {offsets = [0, 80], sizes = [8, 8], strides = [1, 1]} : vector<8x96xf32> to vector<8x8xf32>
    %cst_82 = arith.constant dense<0.000000e+00> : vector<8x8xf32>
    %216 = tpu.matmul %213, %214, %cst_82 {dimension_numbers = #tpu.dot_dimension_numbers<[1], [1], [0], [0], [0, 0, 1, 0], [], []>} : vector<8x8xf32>, vector<8x8xf32>, vector<8x8xf32> -> vector<8x8xf32>
    %cst_83 = arith.constant dense<0xFF800000> : vector<8xf32>
    %217 = vector.multi_reduction <maximumf>, %216, %cst_83 [1] : vector<8x8xf32> to vector<8xf32>
    %218 = vector.shape_cast %217 : vector<8xf32> to vector<8x1xf32>
    %219 = vector.broadcast %218 : vector<8x1xf32> to vector<8x8xf32>
    %220 = arith.subf %216, %219 : vector<8x8xf32>
    %221 = math.exp %220 : vector<8x8xf32>
    %cst_84 = arith.constant dense<0.000000e+00> : vector<8xf32>
    %222 = vector.multi_reduction <add>, %221, %cst_84 [1] : vector<8x8xf32> to vector<8xf32>
    %223 = vector.shape_cast %222 : vector<8xf32> to vector<8x1xf32>
    %224 = tpu.reciprocal %223 {approx = true} : vector<8x1xf32> -> vector<8x1xf32>
    %225 = vector.broadcast %224 : vector<8x1xf32> to vector<8x8xf32>
    %226 = arith.mulf %221, %225 : vector<8x8xf32>
    %cst_85 = arith.constant dense<0.000000e+00> : vector<8x8xf32>
    %227 = tpu.matmul %226, %215, %cst_85 {dimension_numbers = #tpu.dot_dimension_numbers<[1], [0], [0], [1], [0, 0, 1, 1], [], []>} : vector<8x8xf32>, vector<8x8xf32>, vector<8x8xf32> -> vector<8x8xf32>
    %c16_86 = arith.constant 16 : index
    %c16_87 = arith.constant 16 : index
    %228 = vector.load %arg15[%c16_86, %c16_87] : memref<32x32xf32, #tpu.memory_space<vmem>>, vector<8x8xf32>
    tpu.vector_store %arg15[%c16_86, %c16_87], %227 {strides = array<i32>} : memref<32x32xf32, #tpu.memory_space<vmem>>, vector<8x8xf32>,
    %229 = vector.extract_strided_slice %174 {offsets = [0, 24], sizes = [8, 8], strides = [1, 1]} : vector<8x96xf32> to vector<8x8xf32>
    %cst_88 = arith.constant 0.353553385 : f32
    %230 = vector.broadcast %cst_88 : f32 to vector<8x8xf32>
    %231 = arith.mulf %229, %230 : vector<8x8xf32>
    %232 = vector.extract_strided_slice %174 {offsets = [0, 56], sizes = [8, 8], strides = [1, 1]} : vector<8x96xf32> to vector<8x8xf32>
    %233 = vector.extract_strided_slice %174 {offsets = [0, 88], sizes = [8, 8], strides = [1, 1]} : vector<8x96xf32> to vector<8x8xf32>
    %cst_89 = arith.constant dense<0.000000e+00> : vector<8x8xf32>
    %234 = tpu.matmul %231, %232, %cst_89 {dimension_numbers = #tpu.dot_dimension_numbers<[1], [1], [0], [0], [0, 0, 1, 0], [], []>} : vector<8x8xf32>, vector<8x8xf32>, vector<8x8xf32> -> vector<8x8xf32>
    %cst_90 = arith.constant dense<0xFF800000> : vector<8xf32>
    %235 = vector.multi_reduction <maximumf>, %234, %cst_90 [1] : vector<8x8xf32> to vector<8xf32>
    %236 = vector.shape_cast %235 : vector<8xf32> to vector<8x1xf32>
    %237 = vector.broadcast %236 : vector<8x1xf32> to vector<8x8xf32>
    %238 = arith.subf %234, %237 : vector<8x8xf32>
    %239 = math.exp %238 : vector<8x8xf32>
    %cst_91 = arith.constant dense<0.000000e+00> : vector<8xf32>
    %240 = vector.multi_reduction <add>, %239, %cst_91 [1] : vector<8x8xf32> to vector<8xf32>
    %241 = vector.shape_cast %240 : vector<8xf32> to vector<8x1xf32>
    %242 = tpu.reciprocal %241 {approx = true} : vector<8x1xf32> -> vector<8x1xf32>
    %243 = vector.broadcast %242 : vector<8x1xf32> to vector<8x8xf32>
    %244 = arith.mulf %239, %243 : vector<8x8xf32>
    %cst_92 = arith.constant dense<0.000000e+00> : vector<8x8xf32>
    %245 = tpu.matmul %244, %233, %cst_92 {dimension_numbers = #tpu.dot_dimension_numbers<[1], [0], [0], [1], [0, 0, 1, 1], [], []>} : vector<8x8xf32>, vector<8x8xf32>, vector<8x8xf32> -> vector<8x8xf32>
    %c16_93 = arith.constant 16 : index
    %c24_94 = arith.constant 24 : index
    %246 = vector.load %arg15[%c16_93, %c24_94] : memref<32x32xf32, #tpu.memory_space<vmem>>, vector<8x8xf32>
    tpu.vector_store %arg15[%c16_93, %c24_94], %245 {strides = array<i32>} : memref<32x32xf32, #tpu.memory_space<vmem>>, vector<8x8xf32>,
    %247 = vector.extract_strided_slice %27 {offsets = [24, 0], sizes = [8, 96], strides = [1, 1]} : vector<32x96xf32> to vector<8x96xf32>
    %248 = vector.extract_strided_slice %247 {offsets = [0, 0], sizes = [8, 8], strides = [1, 1]} : vector<8x96xf32> to vector<8x8xf32>
    %cst_95 = arith.constant 0.353553385 : f32
    %249 = vector.broadcast %cst_95 : f32 to vector<8x8xf32>
    %250 = arith.mulf %248, %249 : vector<8x8xf32>
    %251 = vector.extract_strided_slice %247 {offsets = [0, 32], sizes = [8, 8], strides = [1, 1]} : vector<8x96xf32> to vector<8x8xf32>
    %252 = vector.extract_strided_slice %247 {offsets = [0, 64], sizes = [8, 8], strides = [1, 1]} : vector<8x96xf32> to vector<8x8xf32>
    %cst_96 = arith.constant dense<0.000000e+00> : vector<8x8xf32>
    %253 = tpu.matmul %250, %251, %cst_96 {dimension_numbers = #tpu.dot_dimension_numbers<[1], [1], [0], [0], [0, 0, 1, 0], [], []>} : vector<8x8xf32>, vector<8x8xf32>, vector<8x8xf32> -> vector<8x8xf32>
    %cst_97 = arith.constant dense<0xFF800000> : vector<8xf32>
    %254 = vector.multi_reduction <maximumf>, %253, %cst_97 [1] : vector<8x8xf32> to vector<8xf32>
    %255 = vector.shape_cast %254 : vector<8xf32> to vector<8x1xf32>
    %256 = vector.broadcast %255 : vector<8x1xf32> to vector<8x8xf32>
    %257 = arith.subf %253, %256 : vector<8x8xf32>
    %258 = math.exp %257 : vector<8x8xf32>
    %cst_98 = arith.constant dense<0.000000e+00> : vector<8xf32>
    %259 = vector.multi_reduction <add>, %258, %cst_98 [1] : vector<8x8xf32> to vector<8xf32>
    %260 = vector.shape_cast %259 : vector<8xf32> to vector<8x1xf32>
    %261 = tpu.reciprocal %260 {approx = true} : vector<8x1xf32> -> vector<8x1xf32>
    %262 = vector.broadcast %261 : vector<8x1xf32> to vector<8x8xf32>
    %263 = arith.mulf %258, %262 : vector<8x8xf32>
    %cst_99 = arith.constant dense<0.000000e+00> : vector<8x8xf32>
    %264 = tpu.matmul %263, %252, %cst_99 {dimension_numbers = #tpu.dot_dimension_numbers<[1], [0], [0], [1], [0, 0, 1, 1], [], []>} : vector<8x8xf32>, vector<8x8xf32>, vector<8x8xf32> -> vector<8x8xf32>
    %c24_100 = arith.constant 24 : index
    %c0_101 = arith.constant 0 : index
    %265 = vector.load %arg15[%c24_100, %c0_101] : memref<32x32xf32, #tpu.memory_space<vmem>>, vector<8x8xf32>
    tpu.vector_store %arg15[%c24_100, %c0_101], %264 {strides = array<i32>} : memref<32x32xf32, #tpu.memory_space<vmem>>, vector<8x8xf32>,
    %266 = vector.extract_strided_slice %247 {offsets = [0, 8], sizes = [8, 8], strides = [1, 1]} : vector<8x96xf32> to vector<8x8xf32>
    %cst_102 = arith.constant 0.353553385 : f32
    %267 = vector.broadcast %cst_102 : f32 to vector<8x8xf32>
    %268 = arith.mulf %266, %267 : vector<8x8xf32>
    %269 = vector.extract_strided_slice %247 {offsets = [0, 40], sizes = [8, 8], strides = [1, 1]} : vector<8x96xf32> to vector<8x8xf32>
    %270 = vector.extract_strided_slice %247 {offsets = [0, 72], sizes = [8, 8], strides = [1, 1]} : vector<8x96xf32> to vector<8x8xf32>
    %cst_103 = arith.constant dense<0.000000e+00> : vector<8x8xf32>
    %271 = tpu.matmul %268, %269, %cst_103 {dimension_numbers = #tpu.dot_dimension_numbers<[1], [1], [0], [0], [0, 0, 1, 0], [], []>} : vector<8x8xf32>, vector<8x8xf32>, vector<8x8xf32> -> vector<8x8xf32>
    %cst_104 = arith.constant dense<0xFF800000> : vector<8xf32>
    %272 = vector.multi_reduction <maximumf>, %271, %cst_104 [1] : vector<8x8xf32> to vector<8xf32>
    %273 = vector.shape_cast %272 : vector<8xf32> to vector<8x1xf32>
    %274 = vector.broadcast %273 : vector<8x1xf32> to vector<8x8xf32>
    %275 = arith.subf %271, %274 : vector<8x8xf32>
    %276 = math.exp %275 : vector<8x8xf32>
    %cst_105 = arith.constant dense<0.000000e+00> : vector<8xf32>
    %277 = vector.multi_reduction <add>, %276, %cst_105 [1] : vector<8x8xf32> to vector<8xf32>
    %278 = vector.shape_cast %277 : vector<8xf32> to vector<8x1xf32>
    %279 = tpu.reciprocal %278 {approx = true} : vector<8x1xf32> -> vector<8x1xf32>
    %280 = vector.broadcast %279 : vector<8x1xf32> to vector<8x8xf32>
    %281 = arith.mulf %276, %280 : vector<8x8xf32>
    %cst_106 = arith.constant dense<0.000000e+00> : vector<8x8xf32>
    %282 = tpu.matmul %281, %270, %cst_106 {dimension_numbers = #tpu.dot_dimension_numbers<[1], [0], [0], [1], [0, 0, 1, 1], [], []>} : vector<8x8xf32>, vector<8x8xf32>, vector<8x8xf32> -> vector<8x8xf32>
    %c24_107 = arith.constant 24 : index
    %c8_108 = arith.constant 8 : index
    %283 = vector.load %arg15[%c24_107, %c8_108] : memref<32x32xf32, #tpu.memory_space<vmem>>, vector<8x8xf32>
    tpu.vector_store %arg15[%c24_107, %c8_108], %282 {strides = array<i32>} : memref<32x32xf32, #tpu.memory_space<vmem>>, vector<8x8xf32>,
    %284 = vector.extract_strided_slice %247 {offsets = [0, 16], sizes = [8, 8], strides = [1, 1]} : vector<8x96xf32> to vector<8x8xf32>
    %cst_109 = arith.constant 0.353553385 : f32
    %285 = vector.broadcast %cst_109 : f32 to vector<8x8xf32>
    %286 = arith.mulf %284, %285 : vector<8x8xf32>
    %287 = vector.extract_strided_slice %247 {offsets = [0, 48], sizes = [8, 8], strides = [1, 1]} : vector<8x96xf32> to vector<8x8xf32>
    %288 = vector.extract_strided_slice %247 {offsets = [0, 80], sizes = [8, 8], strides = [1, 1]} : vector<8x96xf32> to vector<8x8xf32>
    %cst_110 = arith.constant dense<0.000000e+00> : vector<8x8xf32>
    %289 = tpu.matmul %286, %287, %cst_110 {dimension_numbers = #tpu.dot_dimension_numbers<[1], [1], [0], [0], [0, 0, 1, 0], [], []>} : vector<8x8xf32>, vector<8x8xf32>, vector<8x8xf32> -> vector<8x8xf32>
    %cst_111 = arith.constant dense<0xFF800000> : vector<8xf32>
    %290 = vector.multi_reduction <maximumf>, %289, %cst_111 [1] : vector<8x8xf32> to vector<8xf32>
    %291 = vector.shape_cast %290 : vector<8xf32> to vector<8x1xf32>
    %292 = vector.broadcast %291 : vector<8x1xf32> to vector<8x8xf32>
    %293 = arith.subf %289, %292 : vector<8x8xf32>
    %294 = math.exp %293 : vector<8x8xf32>
    %cst_112 = arith.constant dense<0.000000e+00> : vector<8xf32>
    %295 = vector.multi_reduction <add>, %294, %cst_112 [1] : vector<8x8xf32> to vector<8xf32>
    %296 = vector.shape_cast %295 : vector<8xf32> to vector<8x1xf32>
    %297 = tpu.reciprocal %296 {approx = true} : vector<8x1xf32> -> vector<8x1xf32>
    %298 = vector.broadcast %297 : vector<8x1xf32> to vector<8x8xf32>
    %299 = arith.mulf %294, %298 : vector<8x8xf32>
    %cst_113 = arith.constant dense<0.000000e+00> : vector<8x8xf32>
    %300 = tpu.matmul %299, %288, %cst_113 {dimension_numbers = #tpu.dot_dimension_numbers<[1], [0], [0], [1], [0, 0, 1, 1], [], []>} : vector<8x8xf32>, vector<8x8xf32>, vector<8x8xf32> -> vector<8x8xf32>
    %c24_114 = arith.constant 24 : index
    %c16_115 = arith.constant 16 : index
    %301 = vector.load %arg15[%c24_114, %c16_115] : memref<32x32xf32, #tpu.memory_space<vmem>>, vector<8x8xf32>
    tpu.vector_store %arg15[%c24_114, %c16_115], %300 {strides = array<i32>} : memref<32x32xf32, #tpu.memory_space<vmem>>, vector<8x8xf32>,
    %302 = vector.extract_strided_slice %247 {offsets = [0, 24], sizes = [8, 8], strides = [1, 1]} : vector<8x96xf32> to vector<8x8xf32>
    %cst_116 = arith.constant 0.353553385 : f32
    %303 = vector.broadcast %cst_116 : f32 to vector<8x8xf32>
    %304 = arith.mulf %302, %303 : vector<8x8xf32>
    %305 = vector.extract_strided_slice %247 {offsets = [0, 56], sizes = [8, 8], strides = [1, 1]} : vector<8x96xf32> to vector<8x8xf32>
    %306 = vector.extract_strided_slice %247 {offsets = [0, 88], sizes = [8, 8], strides = [1, 1]} : vector<8x96xf32> to vector<8x8xf32>
    %cst_117 = arith.constant dense<0.000000e+00> : vector<8x8xf32>
    %307 = tpu.matmul %304, %305, %cst_117 {dimension_numbers = #tpu.dot_dimension_numbers<[1], [1], [0], [0], [0, 0, 1, 0], [], []>} : vector<8x8xf32>, vector<8x8xf32>, vector<8x8xf32> -> vector<8x8xf32>
    %cst_118 = arith.constant dense<0xFF800000> : vector<8xf32>
    %308 = vector.multi_reduction <maximumf>, %307, %cst_118 [1] : vector<8x8xf32> to vector<8xf32>
    %309 = vector.shape_cast %308 : vector<8xf32> to vector<8x1xf32>
    %310 = vector.broadcast %309 : vector<8x1xf32> to vector<8x8xf32>
    %311 = arith.subf %307, %310 : vector<8x8xf32>
    %312 = math.exp %311 : vector<8x8xf32>
    %cst_119 = arith.constant dense<0.000000e+00> : vector<8xf32>
    %313 = vector.multi_reduction <add>, %312, %cst_119 [1] : vector<8x8xf32> to vector<8xf32>
    %314 = vector.shape_cast %313 : vector<8xf32> to vector<8x1xf32>
    %315 = tpu.reciprocal %314 {approx = true} : vector<8x1xf32> -> vector<8x1xf32>
    %316 = vector.broadcast %315 : vector<8x1xf32> to vector<8x8xf32>
    %317 = arith.mulf %312, %316 : vector<8x8xf32>
    %cst_120 = arith.constant dense<0.000000e+00> : vector<8x8xf32>
    %318 = tpu.matmul %317, %306, %cst_120 {dimension_numbers = #tpu.dot_dimension_numbers<[1], [0], [0], [1], [0, 0, 1, 1], [], []>} : vector<8x8xf32>, vector<8x8xf32>, vector<8x8xf32> -> vector<8x8xf32>
    %c24_121 = arith.constant 24 : index
    %c24_122 = arith.constant 24 : index
    %319 = vector.load %arg15[%c24_121, %c24_122] : memref<32x32xf32, #tpu.memory_space<vmem>>, vector<8x8xf32>
    tpu.vector_store %arg15[%c24_121, %c24_122], %318 {strides = array<i32>} : memref<32x32xf32, #tpu.memory_space<vmem>>, vector<8x8xf32>,
    %c0_123 = arith.constant 0 : index
    %c0_124 = arith.constant 0 : index
    %320 = vector.load %arg15[%c0_123, %c0_124] : memref<32x32xf32, #tpu.memory_space<vmem>>, vector<32x32xf32>
    %c0_125 = arith.constant 0 : index
    %c0_126 = arith.constant 0 : index
    %321 = vector.load %arg4[%c0_125, %c0_126] : memref<32x32xf32, #tpu.memory_space<vmem>>, vector<32x32xf32>
    %cst_127 = arith.constant dense<0.000000e+00> : vector<32x32xf32>
    %322 = tpu.matmul %320, %321, %cst_127 {dimension_numbers = #tpu.dot_dimension_numbers<[1], [0], [0], [1], [0, 0, 1, 1], [], []>} : vector<32x32xf32>, vector<32x32xf32>, vector<32x32xf32> -> vector<32x32xf32>
    %c0_128 = arith.constant 0 : index
    %c0_129 = arith.constant 0 : index
    %323 = vector.load %arg5[%c0_128, %c0_129] : memref<1x32xf32, #tpu.memory_space<vmem>>, vector<1x32xf32>
    %324 = vector.broadcast %323 : vector<1x32xf32> to vector<32x32xf32>
    %325 = arith.addf %322, %324 : vector<32x32xf32>
    %326 = arith.addf %0, %325 : vector<32x32xf32>
    %c0_130 = arith.constant 0 : index
    %c0_131 = arith.constant 0 : index
    %327 = vector.load %arg8[%c0_130, %c0_131] : memref<1x32xf32, #tpu.memory_space<vmem>>, vector<1x32xf32>
    %c0_132 = arith.constant 0 : index
    %c0_133 = arith.constant 0 : index
    %328 = vector.load %arg9[%c0_132, %c0_133] : memref<1x32xf32, #tpu.memory_space<vmem>>, vector<1x32xf32>
    %cst_134 = arith.constant dense<0.000000e+00> : vector<32xf32>
    %329 = vector.multi_reduction <add>, %326, %cst_134 [1] : vector<32x32xf32> to vector<32xf32>
    %330 = vector.shape_cast %329 : vector<32xf32> to vector<32x1xf32>
    %cst_135 = arith.constant 3.200000e+01 : f32
    %331 = vector.broadcast %cst_135 : f32 to vector<32x1xf32>
    %332 = arith.divf %330, %331 : vector<32x1xf32>
    %333 = vector.broadcast %332 : vector<32x1xf32> to vector<32x32xf32>
    %334 = arith.subf %326, %333 : vector<32x32xf32>
    %335 = arith.mulf %334, %334 : vector<32x32xf32>
    %cst_136 = arith.constant dense<0.000000e+00> : vector<32xf32>
    %336 = vector.multi_reduction <add>, %335, %cst_136 [1] : vector<32x32xf32> to vector<32xf32>
    %337 = vector.shape_cast %336 : vector<32xf32> to vector<32x1xf32>
    %cst_137 = arith.constant 3.200000e+01 : f32
    %338 = vector.broadcast %cst_137 : f32 to vector<32x1xf32>
    %339 = arith.divf %337, %338 : vector<32x1xf32>
    %cst_138 = arith.constant 9.99999974E-6 : f32
    %340 = vector.broadcast %cst_138 : f32 to vector<32x1xf32>
    %341 = arith.addf %339, %340 : vector<32x1xf32>
    %342 = math.rsqrt %341 : vector<32x1xf32>
    %343 = vector.broadcast %342 : vector<32x1xf32> to vector<32x32xf32>
    %344 = arith.mulf %334, %343 : vector<32x32xf32>
    %345 = vector.broadcast %327 : vector<1x32xf32> to vector<32x32xf32>
    %346 = arith.mulf %344, %345 : vector<32x32xf32>
    %347 = vector.broadcast %328 : vector<1x32xf32> to vector<32x32xf32>
    %348 = arith.addf %346, %347 : vector<32x32xf32>
    %c0_139 = arith.constant 0 : index
    %c0_140 = arith.constant 0 : index
    %349 = vector.load %arg10[%c0_139, %c0_140] : memref<32x64xf32, #tpu.memory_space<vmem>>, vector<32x64xf32>
    %cst_141 = arith.constant dense<0.000000e+00> : vector<32x64xf32>
    %350 = tpu.matmul %348, %349, %cst_141 {dimension_numbers = #tpu.dot_dimension_numbers<[1], [0], [0], [1], [0, 0, 1, 1], [], []>} : vector<32x32xf32>, vector<32x64xf32>, vector<32x64xf32> -> vector<32x64xf32>
    %c0_142 = arith.constant 0 : index
    %c0_143 = arith.constant 0 : index
    %351 = vector.load %arg11[%c0_142, %c0_143] : memref<1x64xf32, #tpu.memory_space<vmem>>, vector<1x64xf32>
    %352 = vector.broadcast %351 : vector<1x64xf32> to vector<32x64xf32>
    %353 = arith.addf %350, %352 : vector<32x64xf32>
    %cst_144 = arith.constant 0.000000e+00 : f32
    %354 = vector.broadcast %cst_144 : f32 to vector<32x64xf32>
    %355 = arith.maximumf %353, %354 : vector<32x64xf32>
    %c0_145 = arith.constant 0 : index
    %c0_146 = arith.constant 0 : index
    %356 = vector.load %arg12[%c0_145, %c0_146] : memref<64x32xf32, #tpu.memory_space<vmem>>, vector<64x32xf32>
    %cst_147 = arith.constant dense<0.000000e+00> : vector<32x32xf32>
    %357 = tpu.matmul %355, %356, %cst_147 {dimension_numbers = #tpu.dot_dimension_numbers<[1], [0], [0], [1], [0, 0, 1, 1], [], []>} : vector<32x64xf32>, vector<64x32xf32>, vector<32x32xf32> -> vector<32x32xf32>
    %c0_148 = arith.constant 0 : index
    %c0_149 = arith.constant 0 : index
    %358 = vector.load %arg13[%c0_148, %c0_149] : memref<1x32xf32, #tpu.memory_space<vmem>>, vector<1x32xf32>
    %359 = vector.broadcast %358 : vector<1x32xf32> to vector<32x32xf32>
    %360 = arith.addf %357, %359 : vector<32x32xf32>
    %361 = arith.addf %326, %360 : vector<32x32xf32>
    %c0_150 = arith.constant 0 : index
    %c0_151 = arith.constant 0 : index
    %362 = vector.load %arg14[%c0_150, %c0_151] : memref<32x32xf32, #tpu.memory_space<vmem>>, vector<32x32xf32>
    tpu.vector_store %arg14[%c0_150, %c0_151], %361 {strides = array<i32>} : memref<32x32xf32, #tpu.memory_space<vmem>>, vector<32x32xf32>,
    return
  }
  func.func @transform_0(%arg0: i32) -> (i32, i32) {
    %c0_i32 = arith.constant 0 : i32
    %c0_i32_0 = arith.constant 0 : i32
    return %arg0, %c0_i32 : i32, i32
  }
  func.func @transform_1(%arg0: i32) -> (i32, i32) {
    %c0_i32 = arith.constant 0 : i32
    %c0_i32_0 = arith.constant 0 : i32
    %c0_i32_1 = arith.constant 0 : i32
    return %c0_i32, %c0_i32_0 : i32, i32
  }
  func.func @transform_2(%arg0: i32) -> (i32, i32) {
    %c0_i32 = arith.constant 0 : i32
    %c0_i32_0 = arith.constant 0 : i32
    %c0_i32_1 = arith.constant 0 : i32
    return %c0_i32, %c0_i32_0 : i32, i32
  }
  func.func @transform_3(%arg0: i32) -> (i32, i32) {
    %c0_i32 = arith.constant 0 : i32
    %c0_i32_0 = arith.constant 0 : i32
    %c0_i32_1 = arith.constant 0 : i32
    return %c0_i32, %c0_i32_0 : i32, i32
  }
  func.func @transform_4(%arg0: i32) -> (i32, i32) {
    %c0_i32 = arith.constant 0 : i32
    %c0_i32_0 = arith.constant 0 : i32
    %c0_i32_1 = arith.constant 0 : i32
    return %c0_i32, %c0_i32_0 : i32, i32
  }
  func.func @transform_5(%arg0: i32) -> (i32, i32) {
    %c0_i32 = arith.constant 0 : i32
    %c0_i32_0 = arith.constant 0 : i32
    %c0_i32_1 = arith.constant 0 : i32
    return %c0_i32, %c0_i32_0 : i32, i32
  }
  func.func @transform_6(%arg0: i32) -> (i32, i32) {
    %c0_i32 = arith.constant 0 : i32
    %c0_i32_0 = arith.constant 0 : i32
    %c0_i32_1 = arith.constant 0 : i32
    return %c0_i32, %c0_i32_0 : i32, i32
  }
  func.func @transform_7(%arg0: i32) -> (i32, i32) {
    %c0_i32 = arith.constant 0 : i32
    %c0_i32_0 = arith.constant 0 : i32
    %c0_i32_1 = arith.constant 0 : i32
    return %c0_i32, %c0_i32_0 : i32, i32
  }
  func.func @transform_8(%arg0: i32) -> (i32, i32) {
    %c0_i32 = arith.constant 0 : i32
    %c0_i32_0 = arith.constant 0 : i32
    %c0_i32_1 = arith.constant 0 : i32
    return %c0_i32, %c0_i32_0 : i32, i32
  }
  func.func @transform_9(%arg0: i32) -> (i32, i32) {
    %c0_i32 = arith.constant 0 : i32
    %c0_i32_0 = arith.constant 0 : i32
    %c0_i32_1 = arith.constant 0 : i32
    return %c0_i32, %c0_i32_0 : i32, i32
  }
  func.func @transform_10(%arg0: i32) -> (i32, i32) {
    %c0_i32 = arith.constant 0 : i32
    %c0_i32_0 = arith.constant 0 : i32
    %c0_i32_1 = arith.constant 0 : i32
    return %c0_i32, %c0_i32_0 : i32, i32
  }
  func.func @transform_11(%arg0: i32) -> (i32, i32) {
    %c0_i32 = arith.constant 0 : i32
    %c0_i32_0 = arith.constant 0 : i32
    %c0_i32_1 = arith.constant 0 : i32
    return %c0_i32, %c0_i32_0 : i32, i32
  }
  func.func @transform_12(%arg0: i32) -> (i32, i32) {
    %c0_i32 = arith.constant 0 : i32
    %c0_i32_0 = arith.constant 0 : i32
    %c0_i32_1 = arith.constant 0 : i32
    return %c0_i32, %c0_i32_0 : i32, i32
  }
  func.func @transform_13(%arg0: i32) -> (i32, i32) {
    %c0_i32 = arith.constant 0 : i32
    %c0_i32_0 = arith.constant 0 : i32
    return %arg0, %c0_i32 : i32, i32
  }
}

</mosaic_0001>

<bundles_post_ra>
// kernel: tpu_custom_call.1
= control target key start
LH: loop header
LB: loop body
LE: loop exit
PB: predicated region body
PF: predicated region fallthrough
CT: control target
= control target key end

     0   :  { %18 = vsyncpa [#allocation4], 0  ;;  %s4704_s0 = inlined_call_operand.vmem [shape: f32[32,32], index: 0, kind: input, shape index: {}]   ;;  %s4705_s1 = inlined_call_operand.vmem [shape: f32[32,96], index: 1, kind: input, shape index: {}]   ;;  %s4706_s2 = inlined_call_operand.vmem [shape: f32[1,96], index: 2, kind: input, shape index: {}]   ;;  %s4707_s3 = inlined_call_operand.vmem [shape: f32[32,32], index: 3, kind: input, shape index: {}]   ;;  %s4708_s4 = inlined_call_operand.vmem [shape: f32[1,32], index: 4, kind: input, shape index: {}]   ;;  %s4709_s5 = inlined_call_operand.vmem [shape: f32[1,32], index: 5, kind: input, shape index: {}]   ;;  %s4710_s6 = inlined_call_operand.vmem [shape: f32[1,32], index: 6, kind: input, shape index: {}]   ;;  %s4711_s7 = inlined_call_operand.vmem [shape: f32[1,32], index: 7, kind: input, shape index: {}]   ;;  %s4712_s8 = inlined_call_operand.vmem [shape: f32[1,32], index: 8, kind: input, shape index: {}]   ;;  %s4713_s9 = inlined_call_operand.hbm [shape: f32[32,64], index: 9, kind: input, shape index: {}]   ;;  %s4714_s10 = inlined_call_operand.vmem [shape: f32[1,64], index: 10, kind: input, shape index: {}]   ;;  %s4715_s11 = inlined_call_operand.vmem [shape: f32[64,32], index: 11, kind: input, shape index: {}]   ;;  %s4716_s12 = inlined_call_operand.vmem [shape: f32[1,32], index: 12, kind: input, shape index: {}]   ;;  %s4717_s13 = inlined_call_operand.hbm [shape: f32[32,32], index: 13, kind: output, shape index: {}]  }
   0x1   :  { %19 = vsyncpa [#allocation5], 0  ;;  %s3986_s25 = smov [#allocation3]   ;;  %s3938_s29 = scalar_lea.hbm %s4713_s9, 512 }
   0x2   :  { %s43_s26 = sshll.u32 %s3986_s25, 4  ;;  %p3939_p0 = scmp.ne.s32.totalorder %s4713_s9, %s3938_s29  ;;  %s44_s26 = int_to_ptr.vmem [resolvable:$true] %s43_s26 }
   0x3   :  { %p3942_p1 = scmp.lt.u32.totalorder %s3938_s29, %s4713_s9 }
   0x5   :  { %p3944_p2 = pnand %p3942_p1, %p3939_p0 }
   0x7   :  { %3947 = shalt.err (!%p3944_p2)
}
   0x8   :  { %s3948_s17 = scalar_lea.vmem %s44_s26, 512  ;;  %p3953_p4 = scmp.lt.s32.totalorder %s44_s26, %s44_s26 }
   0x9   :  { %p3949_p3 = scmp.ne.s32.totalorder %s44_s26, %s3948_s17  ;;  %p3954_p5 = scmp.lt.s32.totalorder %s3948_s17, %s3948_s17 }
   0xb   :  { %p3955_p6 = por %p3954_p5, %p3953_p4 }
   0xd   :  { %p3956_p7 = pnand %p3955_p6, %p3949_p3 }
   0xf   :  { %3959 = shalt.err (!%p3956_p7)
}
  0x10   :  { %s3987_s18 = smov 128   ;;  %s3988_s19 = smov 8  }
  0x11   :  { %49 = dma.hbm_to_vmem [thread:$0]  %s4713_s9, 512, %s44_s26, [#allocation4], %s3987_s18, %s3987_s18, %s3988_s19  }
  0x12   :  { %3982 = dma.done.wait [#allocation4], 512  }
  0x13   :  { %3983 = vsyncadd [#allocation4], 4294966784  ;;  %vm65_vm0 = vcmask 261120   ;;  %v59_v0 = vld [vmem:[%s4704_s0] sm:$0xff]  ;;  %v60_v1 = vld [vmem:[%s4704_s0 + $0x8] sm:$0xff]  ;;  %v3989_v57 = vmov 0.0  }
  0x14   :  { %v66_v2 = vsel %vm65_vm0, %v59_v0, 0.0  ;;  %v69_v3 = vsel %vm65_vm0, %v60_v1, 0.0  ;;  %v61_v4 = vld [vmem:[%s4704_s0 + $0x10] sm:$0xff]  ;;  %v62_v15 = vld [vmem:[%s4704_s0 + $0x18] sm:$0xff]  ;;  %v139_v23 = vld [vmem:[%s4705_s1] sm:$0xff]  ;;  %3590 = vmatprep.subr.mxu1 %v3989_v57  ;;  %vm3990_vm1 = vmmov 0  }
  0x15   :  { %67 = vadd.xlane.f32.xlu0 %v66_v2  ;;  %v72_v5 = vsel %vm65_vm0, %v61_v4, 0.0  ;;  %v75_v17 = vsel %vm65_vm0, %v62_v15, 0.0  ;;  %v140_v24 = vld [vmem:[%s4705_s1 + $0x8] sm:$0xff]  ;;  %v141_v26 = vld [vmem:[%s4705_s1 + $0x10] sm:$0xff]  ;;  %v142_v27 = vld [vmem:[%s4705_s1 + $0x18] sm:$0xff]  ;;  %3592 = vmatprep.mubr.msk.f32.mxu1 %vm3990_vm1, %v3989_v57  ;;  %s3991_s25 = smov 96  }
  0x16   :  { %v3795_v25 = vpack.c.bf16 %v140_v24, %v139_v23  ;;  %v3799_v28 = vpack.c.bf16 %v142_v27, %v141_v26  ;;  %v3399_v41 = vld [vmem:[%s4709_s5] ss:$0 sm:$0xff]  ;;  %s3992_s27 = smov 88   ;;  %s3993_s28 = smov 80   ;;  %vm251_vm2 = vcmask 64512   ;;  %vm584_vm3 = vcmask 130112  }
  0x17   :  { %v3400_v43 = vld [vmem:[%s4710_s6] ss:$0 sm:$0xff]  ;;  %s3994_s9 = smov 72   ;;  %s3996_s26 = smov 112   ;;  %vm755_vm4 = vcmask 195712   ;;  %vm926_vm5 = vcmask 261312  }
  0x18   :  { %3796 = vmatprep.subr.bf16.mxu0 %v3795_v25  ;;  %s3997_s29 = smov 104   ;;  %s3998_s30 = smov 48   ;;  %vm3276_vm6 = vcmask 523264  }
  0x19   :  { %70 = vadd.xlane.f32.xlu0 %v69_v3  ;;  %3798 = vmatpush3.bf16.msra.mxu0 %v3795_v25  ;;  %s3999_s14 = smov 40   ;;  %s4000_s15 = smov 56  }
  0x1a   :  { %3800 = vmatprep.subr.bf16.mxu0 %v3799_v28  ;;  %s4001_s16 = smov 64   ;;  %s4002_s17 = smov 16  }
  0x1b   :  { %s4003_s20 = smov 24  }
  0x1d   :  { %73 = vadd.xlane.f32.xlu0 %v72_v5  ;;  %3802 = vmatpush3.bf16.msra.mxu0 %v3799_v28 }
  0x1e   :  { %3585 = vmatprep.subr.mxu0 %v3989_v57 }
  0xa2   :  { %v68_v6 = vpop.xlane.xlu0 %67 }
  0xa3   :  { %v79_v7 = vmul.f32 0.03125, %v68_v6 }
  0xa5   :  { %v83_v8 = vsub.f32 %v59_v0, %v79_v7 }
  0xa6   :  { %v71_v9 = vpop.xlane.xlu0 %70 }
  0xa7   :  { %v80_v10 = vmul.f32 0.03125, %v71_v9  ;;  %v87_v11 = vmul.f32 %v83_v8, %v83_v8 }
  0xa9   :  { %v84_v12 = vsub.f32 %v60_v1, %v80_v10  ;;  %v91_v13 = vsel %vm65_vm0, %v87_v11, 0.0  ;;  %v3401_v1 = vld [vmem:[%s4706_s2] ss:$0 sm:$0xff]  ;;  %s3995_s2 = smov 120  }
  0xaa   :  { %92 = vadd.xlane.f32.xlu1 %v91_v13  ;;  %v74_v18 = vpop.xlane.xlu0 %73 }
  0xab   :  { %v88_v14 = vmul.f32 %v84_v12, %v84_v12  ;;  %v81_v19 = vmul.f32 0.03125, %v74_v18 }
  0xad   :  { %v94_v16 = vsel %vm65_vm0, %v88_v14, 0.0  ;;  %v85_v20 = vsub.f32 %v61_v4, %v81_v19 }
  0xae   :  { %95 = vadd.xlane.f32.xlu1 %v94_v16 }
  0xaf   :  { %v89_v21 = vmul.f32 %v85_v20, %v85_v20 }
  0xb1   :  { %v97_v22 = vsel %vm65_vm0, %v89_v21, 0.0 }
  0xb2   :  { %76 = vadd.xlane.f32.xlu1 %v75_v17  ;;  %98 = vadd.xlane.f32.xlu0 %v97_v22 }
 0x137   :  { %v93_v29 = vpop.xlane.xlu1 %92 }
 0x138   :  { %v103_v30 = vmul.f32 0.03125, %v93_v29 }
 0x13a   :  { %v107_v31 = vadd.f32 1e-05, %v103_v30 }
 0x13b   :  { %v96_v32 = vpop.xlane.xlu1 %95 }
 0x13c   :  { %3854 = vrsqrt.f32 %v107_v31  ;;  %v104_v33 = vmul.f32 0.03125, %v96_v32 }
 0x13e   :  { %v108_v34 = vadd.f32 1e-05, %v104_v33 }
 0x13f   :  { %v77_v35 = vpop.xlane.xlu1 %76  ;;  %v99_v50 = vpop.xlane.xlu0 %98 }
 0x140   :  { %3856 = vrsqrt.f32 %v108_v34  ;;  %v82_v36 = vmul.f32 0.03125, %v77_v35  ;;  %v105_v51 = vmul.f32 0.03125, %v99_v50 }
 0x142   :  { %v86_v37 = vsub.f32 %v62_v15, %v82_v36  ;;  %v109_v52 = vadd.f32 1e-05, %v105_v51 }
 0x144   :  { %v90_v38 = vmul.f32 %v86_v37, %v86_v37  ;;  %3858 = vrsqrt.f32 %v109_v52 }
 0x146   :  { %v3855_v39 = vpop.eup %3854  ;;  %v100_v40 = vsel %vm65_vm0, %v90_v38, 0.0 }
 0x147   :  { %101 = vadd.xlane.f32.xlu1 %v100_v40  ;;  %v115_v42 = vmul.f32 %v3855_v39, %v83_v8 }
 0x149   :  { %v125_v44 = vmul.f32 %v3399_v41, %v115_v42 }
 0x14a   :  { %v3857_v45 = vpop.eup %3856 }
 0x14b   :  { %v135_v46 = vadd.f32 %v3400_v43, %v125_v44  ;;  %v116_v47 = vmul.f32 %v3857_v45, %v84_v12 }
 0x14d   :  { %3579 = vmatprep.mubr.msk.f32.mxu0 %vm65_vm0, %v135_v46  ;;  %v126_v48 = vmul.f32 %v3399_v41, %v116_v47 }
 0x14e   :  { %v3859_v53 = vpop.eup %3858 }
 0x14f   :  { %v136_v49 = vadd.f32 %v3400_v43, %v126_v48  ;;  %v117_v54 = vmul.f32 %v3859_v53, %v85_v20 }
 0x151   :  { %3580 = vmatmul.mubr.msk.f32.vlgmr.msra.gmra.mrb[0].mxu0 %vm65_vm0, %v136_v49  ;;  %v127_v55 = vmul.f32 %v3399_v41, %v117_v54 }
 0x153   :  { %v137_v56 = vadd.f32 %v3400_v43, %v127_v55 }
 0x155   :  { %3582 = vmatprep.mubr.msk.f32.mxu0 %vm65_vm0, %v137_v56 }
 0x1d4   :  { %v102_v58 = vpop.xlane.xlu1 %101 }
 0x1d5   :  { %v106_v59 = vmul.f32 0.03125, %v102_v58 }
 0x1d7   :  { %v110_v60 = vadd.f32 1e-05, %v106_v59 }
 0x1d9   :  { %3860 = vrsqrt.f32 %v110_v60 }
 0x1e3   :  { %v3861_v61 = vpop.eup %3860 }
 0x1e4   :  { %v118_v62 = vmul.f32 %v3861_v61, %v86_v37 }
 0x1e6   :  { %v128_v63 = vmul.f32 %v3399_v41, %v118_v62 }
 0x1e8   :  { %v138_v0 = vadd.f32 %v3400_v43, %v128_v63 }
 0x1ea   :  { %3583 = vmatmul.mubr.msk.f32.gmra.mrb[2].mxu0 %vm65_vm0, %v138_v0 }
 0x1eb   :  { %3587 = vmatprep.mubr.msk.f32.mxu0 %vm3990_vm1, %v3989_v57 }
 0x224   :  { %v3581_v2 = vpop.f32.mrb[0].mxu0 }
 0x225   :  { %v228_v3 = vpop.f32.mrb[1].mxu0  ;;  %v4151_v5 = vadd.f32 %v3581_v2, %v3401_v1 }
 0x226   :  { %v4141_v4 = vadd.f32 %v3401_v1, %v228_v3 }
 0x227   :  { %v4156_v6 = vmul.f32 0.35355338, %v4151_v5 }
 0x228   :  { %249 = vrot.lane.b32.xlu0 %v4141_v4, %s3991_s25  ;;  %v247_v8 = vmul.f32 0.35355338, %v4141_v4 }
 0x22c   :  { %417 = vrot.lane.b32.xlu0 %v4141_v4, %s3992_s27 }
 0x230   :  { %588 = vrot.lane.b32.xlu0 %v4141_v4, %s3993_s28 }
 0x234   :  { %759 = vrot.lane.b32.xlu0 %v4141_v4, %s3994_s9 }
 0x238   :  { %930 = vrot.lane.b32.xlu0 %v4151_v5, %s3991_s25 }
 0x23c   :  { %1095 = vrot.lane.b32.xlu0 %v4156_v6, %s3995_s2 }
 0x240   :  { %1265 = vrot.lane.b32.xlu0 %v4156_v6, %s3996_s26 }
 0x244   :  { %1435 = vrot.lane.b32.xlu0 %v4156_v6, %s3997_s29 }
 0x29a   :  { %v250_v7 = vpop.permute.xlu0 %249 }
 0x29b   :  { %3586 = vmatpush3.xpose.msk.msra.mxu0 %vm251_vm2, %v250_v7 }
 0x29c   :  { %3600 = vmatprep.subr.mxu0 %v3989_v57 }
 0x29e   :  { %3588 = vmatmul.mubr.msk.f32.vlgmr.msra.gmra.mrb[4].mxu0 %vm251_vm2, %v247_v8  ;;  %v418_v25 = vpop.permute.xlu0 %417 }
 0x29f   :  { %3602 = vmatprep.mubr.msk.f32.mxu0 %vm3990_vm1, %v3989_v57 }
 0x2a2   :  { %v589_v27 = vpop.permute.xlu0 %588 }
 0x2a6   :  { %v760_v30 = vpop.permute.xlu0 %759 }
 0x2aa   :  { %v931_v34 = vpop.permute.xlu0 %930 }
 0x2ae   :  { %v1096_v37 = vpop.permute.xlu0 %1095 }
 0x2b2   :  { %v1266_v39 = vpop.permute.xlu0 %1265 }
 0x2b6   :  { %v1436_v42 = vpop.permute.xlu0 %1435 }
 0x2bd   :  { %v3584_v9 = vpop.f32.mrb[2].mxu0 }
 0x2be   :  { %v238_v10 = vpop.f32.mrb[3].mxu0  ;;  %v4176_v12 = vadd.f32 %v3584_v9, %v3401_v1 }
 0x2bf   :  { %v4170_v11 = vadd.f32 %v3401_v1, %v238_v10 }
 0x2c0   :  { %v4183_v13 = vmul.f32 0.35355338, %v4176_v12 }
 0x2c1   :  { %1774 = vrot.lane.b32.xlu0 %v4170_v11, %s3992_s27  ;;  %v4214_v23 = vmul.f32 0.35355338, %v4170_v11 }
 0x2c5   :  { %1944 = vrot.lane.b32.xlu0 %v4170_v11, %s3993_s28 }
 0x2c9   :  { %2114 = vrot.lane.b32.xlu0 %v4170_v11, %s3994_s9 }
 0x2cd   :  { %2284 = vrot.lane.b32.xlu0 %v4176_v12, %s3991_s25 }
 0x2d1   :  { %2449 = vrot.lane.b32.xlu0 %v4183_v13, %s3995_s2 }
 0x2d5   :  { %2619 = vrot.lane.b32.xlu0 %v4183_v13, %s3996_s26 }
 0x2d9   :  { %2789 = vrot.lane.b32.xlu0 %v4183_v13, %s3997_s29 }
 0x2dd   :  { %675 = vrot.lane.b32.xlu0 %v4141_v4, %s3998_s30 }
 0x2e1   :  { %846 = vrot.lane.b32.xlu0 %v4141_v4, %s3999_s14 }
 0x2e5   :  { %1184 = vrot.lane.b32.xlu0 %v4151_v5, %s4000_s15 }
 0x333   :  { %v1775_v44 = vpop.permute.xlu0 %1774 }
 0x337   :  { %v1945_v46 = vpop.permute.xlu0 %1944 }
 0x33b   :  { %v2115_v49 = vpop.permute.xlu0 %2114 }
 0x33f   :  { %v2285_v51 = vpop.permute.xlu0 %2284 }
 0x343   :  { %v2450_v52 = vpop.permute.xlu0 %2449 }
 0x347   :  { %v2620_v53 = vpop.permute.xlu0 %2619 }
 0x34b   :  { %v2790_v54 = vpop.permute.xlu0 %2789 }
 0x371   :  { %v323_v14 = vpop.f32.mrb[4].mxu0 }
 0x372   :  { %v3589_v15 = vpop.f32.mrb[5].mxu0  ;;  %v327_v16 = vsel %vm251_vm2, %v323_v14, -inf }
 0x373   :  { %328 = vmax.xlane.f32.xlu1 %v327_v16 }
 0x384   :  { %338 = vrot.lane.b32.xlu1 %v4141_v4, %s4001_s16 }
 0x388   :  { %415 = vrot.lane.b32.xlu1 %v247_v8, %s3995_s2 }
 0x400   :  { %v329_v17 = vpop.xlane.xlu1 %328 }
 0x401   :  { %v330_v18 = vsub.f32 %v323_v14, %v329_v17 }
 0x403   :  { %v331_v19 = vmul.f32 1.442695, %v330_v18 }
 0x404   :  { %v339_v20 = vpop.permute.xlu1 %338 }
 0x405   :  { %3862 = vpow2.f32 %v331_v19  ;;  %3591 = vmatpush3.msra.mxu1 %v339_v20 }
 0x406   :  { %3595 = vmatprep.subr.mxu1 %v3989_v57 }
 0x408   :  { %v416_v24 = vpop.permute.xlu1 %415 }
 0x40f   :  { %v3863_v21 = vpop.eup %3862 }
 0x410   :  { %v333_v22 = vsel %vm251_vm2, %v3863_v21, 0.0 }
 0x411   :  { %334 = vadd.xlane.f32.xlu1 %v333_v22 }
 0x422   :  { %586 = vrot.lane.b32.xlu1 %v247_v8, %s3996_s26 }
 0x426   :  { %757 = vrot.lane.b32.xlu1 %v247_v8, %s3997_s29 }
 0x42a   :  { %1097 = vrot.lane.b32.xlu1 %v4151_v5, %s3992_s27 }
 0x42e   :  { %1267 = vrot.lane.b32.xlu1 %v4151_v5, %s3993_s28 }
 0x432   :  { %1437 = vrot.lane.b32.xlu1 %v4151_v5, %s3994_s9 }
 0x436   :  { %1607 = vrot.lane.b32.xlu1 %v4170_v11, %s3991_s25 }
 0x43a   :  { %1772 = vrot.lane.b32.xlu1 %v4214_v23, %s3995_s2 }
 0x43e   :  { %1942 = vrot.lane.b32.xlu1 %v4214_v23, %s3996_s26 }
 0x442   :  { %2112 = vrot.lane.b32.xlu1 %v4214_v23, %s3997_s29 }
 0x446   :  { %2451 = vrot.lane.b32.xlu1 %v4176_v12, %s3992_s27 }
 0x44a   :  { %2621 = vrot.lane.b32.xlu1 %v4176_v12, %s3993_s28 }
 0x44e   :  { %2791 = vrot.lane.b32.xlu1 %v4176_v12, %s3994_s9 }
 0x452   :  { %504 = vrot.lane.b32.xlu1 %v4141_v4, %s4000_s15 }
 0x456   :  { %1018 = vrot.lane.b32.xlu1 %v4151_v5, %s4001_s16 }
 0x49e   :  { %v335_v26 = vpop.xlane.xlu1 %334 }
 0x49f   :  { %3864 = vrcp.f32 %v335_v26 }
 0x4a2   :  { %v587_v28 = vpop.permute.xlu1 %586 }
 0x4a6   :  { %v758_v29 = vpop.permute.xlu1 %757 }
 0x4a9   :  { %v3865_v31 = vpop.eup %3864 }
 0x4aa   :  { %v1098_v32 = vpop.permute.xlu1 %1097  ;;  %v337_v33 = vmul.f32 %v3865_v31, %v3863_v21 }
 0x4ac   :  { %3593 = vmatmul.mubr.msk.f32.vlgmr.msra.gmra.mrb[0].mxu1 %vm251_vm2, %v337_v33 }
 0x4ad   :  { %3596 = vmatpush3.xpose.msk.msra.mxu1 %vm251_vm2, %v418_v25  ;;  %3597 = vmatprep.mubr.msk.f32.mxu1 %vm3990_vm1, %v3989_v57 }
 0x4ae   :  { %v1268_v35 = vpop.permute.xlu1 %1267  ;;  %3605 = vmatprep.subr.mxu1 %v3989_v57 }
 0x4b0   :  { %3598 = vmatmul.mubr.msk.f32.vlgmr.msra.gmra.mrb[2].mxu1 %vm251_vm2, %v416_v24 }
 0x4b1   :  { %3606 = vmatpush3.xpose.msk.msra.mxu1 %vm251_vm2, %v589_v27  ;;  %3607 = vmatprep.mubr.msk.f32.mxu1 %vm3990_vm1, %v3989_v57 }
 0x4b2   :  { %v1438_v36 = vpop.permute.xlu1 %1437  ;;  %3615 = vmatprep.subr.mxu1 %v3989_v57 }
 0x4b4   :  { %3608 = vmatmul.mubr.msk.f32.vlgmr.msra.gmra.mrb[4].mxu1 %vm251_vm2, %v587_v28 }
 0x4b5   :  { %3616 = vmatpush3.xpose.msk.msra.mxu1 %vm251_vm2, %v760_v30  ;;  %3617 = vmatprep.mubr.msk.f32.mxu1 %vm3990_vm1, %v3989_v57 }
 0x4b6   :  { %v1608_v38 = vpop.permute.xlu1 %1607  ;;  %3625 = vmatprep.subr.mxu1 %v3989_v57 }
 0x4b8   :  { %3618 = vmatmul.mubr.msk.f32.vlgmr.msra.gmra.mrb[6].mxu1 %vm251_vm2, %v758_v29 }
 0x4b9   :  { %3626 = vmatpush3.xpose.msk.msra.mxu1 %vm251_vm2, %v931_v34  ;;  %3627 = vmatprep.mubr.msk.f32.mxu1 %vm3990_vm1, %v3989_v57 }
 0x4ba   :  { %v1773_v40 = vpop.permute.xlu1 %1772  ;;  %3635 = vmatprep.subr.mxu1 %v3989_v57 }
 0x4bc   :  { %3628 = vmatmul.mubr.msk.f32.vlgmr.msra.gmra.mrb[8].mxu1 %vm251_vm2, %v4156_v6 }
 0x4bd   :  { %3636 = vmatpush3.xpose.msk.msra.mxu1 %vm251_vm2, %v1098_v32  ;;  %3637 = vmatprep.mubr.msk.f32.mxu1 %vm3990_vm1, %v3989_v57 }
 0x4be   :  { %v1943_v41 = vpop.permute.xlu1 %1942  ;;  %3645 = vmatprep.subr.mxu1 %v3989_v57 }
 0x4c0   :  { %3638 = vmatmul.mubr.msk.f32.vlgmr.msra.gmra.mrb[10].mxu1 %vm251_vm2, %v1096_v37 }
 0x4c1   :  { %3646 = vmatpush3.xpose.msk.msra.mxu1 %vm251_vm2, %v1268_v35  ;;  %3647 = vmatprep.mubr.msk.f32.mxu1 %vm3990_vm1, %v3989_v57 }
 0x4c2   :  { %v2113_v43 = vpop.permute.xlu1 %2112  ;;  %3655 = vmatprep.subr.mxu1 %v3989_v57 }
 0x4c4   :  { %3648 = vmatmul.mubr.msk.f32.vlgmr.msra.gmra.mrb[12].mxu1 %vm251_vm2, %v1266_v39 }
 0x4c5   :  { %3656 = vmatpush3.xpose.msk.msra.mxu1 %vm251_vm2, %v1438_v36  ;;  %3657 = vmatprep.mubr.msk.f32.mxu1 %vm3990_vm1, %v3989_v57 }
 0x4c6   :  { %v2452_v45 = vpop.permute.xlu1 %2451  ;;  %3665 = vmatprep.subr.mxu1 %v3989_v57 }
 0x4c8   :  { %3658 = vmatmul.mubr.msk.f32.vlgmr.msra.gmra.mrb[14].mxu1 %vm251_vm2, %v1436_v42 }
 0x4c9   :  { %3666 = vmatpush3.xpose.msk.msra.mxu1 %vm251_vm2, %v1608_v38  ;;  %3667 = vmatprep.mubr.msk.f32.mxu1 %vm3990_vm1, %v3989_v57 }
 0x4ca   :  { %v2622_v47 = vpop.permute.xlu1 %2621  ;;  %3675 = vmatprep.subr.mxu1 %v3989_v57 }
 0x4cc   :  { %3668 = vmatmul.mubr.msk.f32.vlgmr.msra.gmra.mrb[16].mxu1 %vm251_vm2, %v4214_v23 }
 0x4cd   :  { %3676 = vmatpush3.xpose.msk.msra.mxu1 %vm251_vm2, %v1775_v44  ;;  %3677 = vmatprep.mubr.msk.f32.mxu1 %vm3990_vm1, %v3989_v57 }
 0x4ce   :  { %v2792_v48 = vpop.permute.xlu1 %2791  ;;  %3685 = vmatprep.subr.mxu1 %v3989_v57 }
 0x4d0   :  { %3678 = vmatmul.mubr.msk.f32.vlgmr.msra.gmra.mrb[18].mxu1 %vm251_vm2, %v1773_v40 }
 0x4d1   :  { %3686 = vmatpush3.xpose.msk.msra.mxu1 %vm251_vm2, %v1945_v46  ;;  %3687 = vmatprep.mubr.msk.f32.mxu1 %vm3990_vm1, %v3989_v57 }
 0x4d2   :  { %v505_v50 = vpop.permute.xlu1 %504  ;;  %3695 = vmatprep.subr.mxu1 %v3989_v57 }
 0x4d3   :  { %3601 = vmatpush3.msra.mxu0 %v505_v50 }
 0x4d4   :  { %3688 = vmatmul.mubr.msk.f32.vlgmr.msra.gmra.mrb[20].mxu1 %vm251_vm2, %v1943_v41  ;;  %3610 = vmatprep.subr.mxu0 %v3989_v57  ;;  %v4378_v41 = vpop.permute.xlu0 %675 }
 0x4d5   :  { %3696 = vmatpush3.xpose.msk.msra.mxu1 %vm251_vm2, %v2115_v49  ;;  %3697 = vmatprep.mubr.msk.f32.mxu1 %vm3990_vm1, %v3989_v57 }
 0x4d6   :  { %3705 = vmatprep.subr.mxu1 %v3989_v57 }
 0x4d8   :  { %3698 = vmatmul.mubr.msk.f32.vlgmr.msra.gmra.mrb[22].mxu1 %vm251_vm2, %v2113_v43  ;;  %v4380_v42 = vpop.permute.xlu0 %846  ;;  %v4382_v43 = vpop.permute.xlu1 %1018 }
 0x4d9   :  { %3706 = vmatpush3.xpose.msk.msra.mxu1 %vm251_vm2, %v2285_v51  ;;  %3707 = vmatprep.mubr.msk.f32.mxu1 %vm3990_vm1, %v3989_v57 }
 0x4da   :  { %3715 = vmatprep.subr.mxu1 %v3989_v57 }
 0x4dc   :  { %3708 = vmatmul.mubr.msk.f32.vlgmr.msra.gmra.mrb[24].mxu1 %vm251_vm2, %v4183_v13  ;;  %v4384_v44 = vpop.permute.xlu0 %1184 }
 0x4dd   :  { %3716 = vmatpush3.xpose.msk.msra.mxu1 %vm251_vm2, %v2452_v45  ;;  %3717 = vmatprep.mubr.msk.f32.mxu1 %vm3990_vm1, %v3989_v57 }
 0x4de   :  { %3725 = vmatprep.subr.mxu1 %v3989_v57 }
 0x4e0   :  { %3718 = vmatmul.mubr.msk.f32.vlgmr.msra.gmra.mrb[26].mxu1 %vm251_vm2, %v2450_v52 }
 0x4e1   :  { %3726 = vmatpush3.xpose.msk.msra.mxu1 %vm251_vm2, %v2622_v47  ;;  %3727 = vmatprep.mubr.msk.f32.mxu1 %vm3990_vm1, %v3989_v57 }
 0x4e2   :  { %3735 = vmatprep.subr.mxu1 %v3989_v57 }
 0x4e4   :  { %3728 = vmatmul.mubr.msk.f32.vlgmr.msra.gmra.mrb[28].mxu1 %vm251_vm2, %v2620_v53 }
 0x4e5   :  { %3736 = vmatpush3.xpose.msk.msra.mxu1 %vm251_vm2, %v2792_v48  ;;  %3737 = vmatprep.mubr.msk.f32.mxu1 %vm3990_vm1, %v3989_v57 }
 0x4e8   :  { %3738 = vmatmul.mubr.msk.f32.vlgmr.msra.gmra.mrb[30].mxu1 %vm251_vm2, %v2790_v54 }
 0x57f   :  { %v410_v55 = vpop.f32.mrb[0].mxu1 }
 0x580   :  { %414 = vst.msk [vmem:[#allocation2] sm:$0xff] %vm251_vm2, %v410_v55  ;;  %v3594_v56 = vpop.f32.mrb[1].mxu1 }
 0x583   :  { %v4312_v58 = vpop.f32.mrb[2].mxu1 }
 0x584   :  { %v3599_v59 = vpop.f32.mrb[3].mxu1  ;;  %v493_v60 = vsel %vm251_vm2, %v4312_v58, -inf }
 0x585   :  { %494 = vmax.xlane.f32.xlu1 %v493_v60 }
 0x587   :  { %v4316_v61 = vpop.f32.mrb[4].mxu1 }
 0x588   :  { %v3609_v62 = vpop.f32.mrb[5].mxu1  ;;  %v664_v63 = vsel %vm251_vm2, %v4316_v61, -inf }
 0x589   :  { %665 = vmax.xlane.f32.xlu0 %v664_v63 }
 0x58b   :  { %v4320_v0 = vpop.f32.mrb[6].mxu1 }
 0x58c   :  { %v3619_v1 = vpop.f32.mrb[7].mxu1  ;;  %v835_v2 = vsel %vm251_vm2, %v4320_v0, -inf }
 0x58d   :  { %836 = vmax.xlane.f32.xlu0 %v835_v2 }
 0x58f   :  { %v4324_v3 = vpop.f32.mrb[8].mxu1 }
 0x590   :  { %v3629_v4 = vpop.f32.mrb[9].mxu1  ;;  %v1007_v6 = vsel %vm251_vm2, %v4324_v3, -inf }
 0x591   :  { %1008 = vmax.xlane.f32.xlu0 %v1007_v6 }
 0x593   :  { %v4328_v7 = vpop.f32.mrb[10].mxu1 }
 0x594   :  { %v3639_v8 = vpop.f32.mrb[11].mxu1  ;;  %v1173_v9 = vsel %vm251_vm2, %v4328_v7, -inf }
 0x595   :  { %1174 = vmax.xlane.f32.xlu1 %v1173_v9 }
 0x597   :  { %v4332_v10 = vpop.f32.mrb[12].mxu1 }
 0x598   :  { %v3649_v13 = vpop.f32.mrb[13].mxu1  ;;  %v1343_v14 = vsel %vm251_vm2, %v4332_v10, -inf }
 0x599   :  { %1344 = vmax.xlane.f32.xlu0 %v1343_v14 }
 0x59b   :  { %v4336_v15 = vpop.f32.mrb[14].mxu1 }
 0x59c   :  { %v3659_v16 = vpop.f32.mrb[15].mxu1  ;;  %v1513_v33 = vsel %vm251_vm2, %v4336_v15, -inf }
 0x59f   :  { %v4338_v17 = vpop.f32.mrb[16].mxu1 }
 0x5a0   :  { %v3669_v18 = vpop.f32.mrb[17].mxu1  ;;  %v1684_v34 = vsel %vm251_vm2, %v4338_v17, -inf }
 0x5a3   :  { %v4340_v19 = vpop.f32.mrb[18].mxu1 }
 0x5a4   :  { %v3679_v20 = vpop.f32.mrb[19].mxu1 }
 0x5a6   :  { %1524 = vrot.lane.b32.xlu1 %v4151_v5, %s3999_s14 }
 0x5a7   :  { %v4344_v21 = vpop.f32.mrb[20].mxu1 }
 0x5a8   :  { %v3689_v22 = vpop.f32.mrb[21].mxu1  ;;  %v2020_v35 = vsel %vm251_vm2, %v4344_v21, -inf }
 0x5ab   :  { %v4346_v23 = vpop.f32.mrb[22].mxu1 }
 0x5ac   :  { %v3699_v24 = vpop.f32.mrb[23].mxu1  ;;  %v2190_v36 = vsel %vm251_vm2, %v4346_v23, -inf }
 0x5af   :  { %1354 = vrot.lane.b32.xlu0 %v4151_v5, %s3998_s30  ;;  %v4350_v25 = vpop.f32.mrb[24].mxu1  ;;  %v1850_v5 = vsel %vm251_vm2, %v4340_v19, -inf }
 0x5b0   :  { %v3709_v26 = vpop.f32.mrb[25].mxu1  ;;  %v2361_v37 = vsel %vm251_vm2, %v4350_v25, -inf }
 0x5b3   :  { %v4352_v27 = vpop.f32.mrb[26].mxu1 }
 0x5b4   :  { %v3719_v28 = vpop.f32.mrb[27].mxu1  ;;  %v2527_v38 = vsel %vm251_vm2, %v4352_v27, -inf }
 0x5b7   :  { %v4354_v29 = vpop.f32.mrb[28].mxu1 }
 0x5b8   :  { %v3729_v30 = vpop.f32.mrb[29].mxu1  ;;  %v2697_v39 = vsel %vm251_vm2, %v4354_v29, -inf }
 0x5bb   :  { %v4356_v31 = vpop.f32.mrb[30].mxu1 }
 0x5bc   :  { %v3739_v32 = vpop.f32.mrb[31].mxu1  ;;  %v2867_v40 = vsel %vm251_vm2, %v4356_v31, -inf }
 0x5ca   :  { %1514 = vmax.xlane.f32.xlu1 %v1513_v33 }
 0x5ce   :  { %1685 = vmax.xlane.f32.xlu0 %v1684_v34  ;;  %1851 = vmax.xlane.f32.xlu1 %v1850_v5 }
 0x5d2   :  { %2021 = vmax.xlane.f32.xlu0 %v2020_v35  ;;  %2191 = vmax.xlane.f32.xlu1 %v2190_v36 }
 0x5d6   :  { %2362 = vmax.xlane.f32.xlu0 %v2361_v37  ;;  %2528 = vmax.xlane.f32.xlu1 %v2527_v38 }
 0x5da   :  { %2698 = vmax.xlane.f32.xlu0 %v2697_v39  ;;  %2868 = vmax.xlane.f32.xlu1 %v2867_v40 }
 0x5eb   :  { %1861 = vrot.lane.b32.xlu1 %v4170_v11, %s4000_s15 }
 0x612   :  { %v495_v45 = vpop.xlane.xlu1 %494 }
 0x613   :  { %v496_v46 = vsub.f32 %v4312_v58, %v495_v45 }
 0x615   :  { %v497_v47 = vmul.f32 1.442695, %v496_v46 }
 0x616   :  { %v666_v48 = vpop.xlane.xlu0 %665 }
 0x617   :  { %3866 = vpow2.f32 %v497_v47  ;;  %v667_v49 = vsub.f32 %v4316_v61, %v666_v48 }
 0x619   :  { %v668_v50 = vmul.f32 1.442695, %v667_v49 }
 0x61a   :  { %v837_v51 = vpop.xlane.xlu0 %836 }
 0x61b   :  { %3868 = vpow2.f32 %v668_v50  ;;  %v838_v4 = vsub.f32 %v4320_v0, %v837_v51 }
 0x61d   :  { %v839_v8 = vmul.f32 1.442695, %v838_v4 }
 0x61e   :  { %v1009_v52 = vpop.xlane.xlu0 %1008 }
 0x61f   :  { %v1010_v53 = vsub.f32 %v4324_v3, %v1009_v52 }
 0x621   :  { %v4389_v54 = vpop.eup %3866  ;;  %v1011_v55 = vmul.f32 1.442695, %v1010_v53 }
 0x622   :  { %v499_v56 = vsel %vm251_vm2, %v4389_v54, 0.0  ;;  %v1175_v6 = vpop.xlane.xlu1 %1174 }
 0x623   :  { %3870 = vpow2.f32 %v1011_v55  ;;  %500 = vadd.xlane.f32.xlu0 %v499_v56  ;;  %v1176_v9 = vsub.f32 %v4328_v7, %v1175_v6 }
 0x625   :  { %v4393_v58 = vpop.eup %3868 }
 0x626   :  { %v1345_v59 = vpop.xlane.xlu0 %1344  ;;  %v670_v60 = vsel %vm251_vm2, %v4393_v58, 0.0  ;;  %v4412_v13 = vpop.permute.xlu1 %1524 }
 0x627   :  { %v1346_v61 = vsub.f32 %v4332_v10, %v1345_v59  ;;  %671 = vadd.xlane.f32.xlu1 %v670_v60  ;;  %v1177_v10 = vmul.f32 1.442695, %v1176_v9 }
 0x629   :  { %v1347_v62 = vmul.f32 1.442695, %v1346_v61 }
 0x62a   :  { %v4416_v16 = vpop.permute.xlu0 %1354 }
 0x62b   :  { %3872 = vpow2.f32 %v1347_v62 }
 0x62c   :  { %3874 = vpow2.f32 %v839_v8 }
 0x62d   :  { %v4398_v63 = vpop.eup %3870  ;;  %3876 = vpow2.f32 %v1177_v10 }
 0x62e   :  { %v1013_v1 = vsel %vm251_vm2, %v4398_v63, 0.0 }
 0x62f   :  { %1014 = vadd.xlane.f32.xlu1 %v1013_v1 }
 0x635   :  { %v4402_v2 = vpop.eup %3872 }
 0x636   :  { %v1349_v3 = vsel %vm251_vm2, %v4402_v2, 0.0  ;;  %v4414_v14 = vpop.eup %3874 }
 0x637   :  { %1350 = vadd.xlane.f32.xlu1 %v1349_v3  ;;  %v841_v0 = vsel %vm251_vm2, %v4414_v14, 0.0  ;;  %v4420_v20 = vpop.eup %3876 }
 0x638   :  { %v1179_v28 = vsel %vm251_vm2, %v4420_v20, 0.0 }
 0x639   :  { %1695 = vrot.lane.b32.xlu0 %v4170_v11, %s4001_s16 }
 0x648   :  { %2031 = vrot.lane.b32.xlu1 %v4170_v11, %s3998_s30 }
 0x657   :  { %v1515_v18 = vpop.xlane.xlu1 %1514 }
 0x658   :  { %v1516_v7 = vsub.f32 %v4336_v15, %v1515_v18  ;;  %842 = vadd.xlane.f32.xlu0 %v841_v0 }
 0x65a   :  { %v1517_v22 = vmul.f32 1.442695, %v1516_v7 }
 0x65b   :  { %v1852_v24 = vpop.xlane.xlu1 %1851  ;;  %v1686_v26 = vpop.xlane.xlu0 %1685 }
 0x65c   :  { %3878 = vpow2.f32 %v1517_v22  ;;  %v1853_v30 = vsub.f32 %v4340_v19, %v1852_v24  ;;  %v1687_v32 = vsub.f32 %v4338_v17, %v1686_v26  ;;  %1180 = vadd.xlane.f32.xlu0 %v1179_v28 }
 0x65e   :  { %v1854_v33 = vmul.f32 1.442695, %v1853_v30  ;;  %v1688_v34 = vmul.f32 1.442695, %v1687_v32 }
 0x65f   :  { %v2192_v5 = vpop.xlane.xlu1 %2191  ;;  %v2022_v35 = vpop.xlane.xlu0 %2021 }
 0x660   :  { %3880 = vpow2.f32 %v1854_v33  ;;  %v2193_v15 = vsub.f32 %v4346_v23, %v2192_v5  ;;  %v2023_v36 = vsub.f32 %v4344_v21, %v2022_v35 }
 0x661   :  { %3882 = vpow2.f32 %v1688_v34 }
 0x662   :  { %v2024_v37 = vmul.f32 1.442695, %v2023_v36  ;;  %v2194_v38 = vmul.f32 1.442695, %v2193_v15 }
 0x663   :  { %v2529_v39 = vpop.xlane.xlu1 %2528  ;;  %v2363_v40 = vpop.xlane.xlu0 %2362 }
 0x664   :  { %v2530_v45 = vsub.f32 %v4352_v27, %v2529_v39  ;;  %v2364_v19 = vsub.f32 %v4350_v25, %v2363_v40  ;;  %3884 = vpow2.f32 %v2024_v37 }
 0x665   :  { %3886 = vpow2.f32 %v2194_v38 }
 0x666   :  { %v4431_v17 = vpop.eup %3878  ;;  %v2365_v46 = vmul.f32 1.442695, %v2364_v19  ;;  %v2531_v47 = vmul.f32 1.442695, %v2530_v45 }
 0x667   :  { %v2869_v48 = vpop.xlane.xlu1 %2868  ;;  %v2699_v49 = vpop.xlane.xlu0 %2698  ;;  %v1519_v21 = vsel %vm251_vm2, %v4431_v17, 0.0 }
 0x668   :  { %v2870_v23 = vsub.f32 %v4356_v31, %v2869_v48  ;;  %v2700_v50 = vsub.f32 %v4354_v29, %v2699_v49  ;;  %1520 = vadd.xlane.f32.xlu0 %v1519_v21  ;;  %3888 = vpow2.f32 %v2365_v46 }
 0x669   :  { %3890 = vpow2.f32 %v2531_v47 }
 0x66a   :  { %v4437_v27 = vpop.eup %3880  ;;  %v2701_v25 = vmul.f32 1.442695, %v2700_v50  ;;  %v2871_v52 = vmul.f32 1.442695, %v2870_v23 }
 0x66b   :  { %v4439_v51 = vpop.eup %3882  ;;  %v1856_v53 = vsel %vm251_vm2, %v4437_v27, 0.0  ;;  %v4479_v9 = vpop.permute.xlu1 %1861 }
 0x66c   :  { %1857 = vadd.xlane.f32.xlu1 %v1856_v53  ;;  %v1690_v55 = vsel %vm251_vm2, %v4439_v51, 0.0  ;;  %3892 = vpow2.f32 %v2701_v25 }
 0x66d   :  { %1691 = vadd.xlane.f32.xlu0 %v1690_v55  ;;  %3894 = vpow2.f32 %v2871_v52 }
 0x66e   :  { %v4445_v31 = vpop.eup %3884 }
 0x66f   :  { %v2026_v29 = vsel %vm251_vm2, %v4445_v31, 0.0  ;;  %v4449_v56 = vpop.eup %3886 }
 0x670   :  { %v2196_v60 = vsel %vm251_vm2, %v4449_v56, 0.0 }
 0x671   :  { %2027 = vadd.xlane.f32.xlu0 %v2026_v29 }
 0x672   :  { %v4451_v59 = vpop.eup %3888 }
 0x673   :  { %v2367_v61 = vsel %vm251_vm2, %v4451_v59, 0.0  ;;  %v4457_v62 = vpop.eup %3890 }
 0x674   :  { %2368 = vadd.xlane.f32.xlu1 %v2367_v61  ;;  %v2533_v3 = vsel %vm251_vm2, %v4457_v62, 0.0 }
 0x675   :  { %2197 = vadd.xlane.f32.xlu0 %v2196_v60 }
 0x676   :  { %v4459_v1 = vpop.eup %3892 }
 0x677   :  { %v2703_v4 = vsel %vm251_vm2, %v4459_v1, 0.0  ;;  %v4465_v6 = vpop.eup %3894 }
 0x678   :  { %2704 = vadd.xlane.f32.xlu1 %v2703_v4  ;;  %v2873_v8 = vsel %vm251_vm2, %v4465_v6, 0.0 }
 0x679   :  { %2534 = vadd.xlane.f32.xlu0 %v2533_v3  ;;  %v2964_v3 = vld [vmem:[%s4707_s3 + $0x8] sm:$0xff] }
 0x67d   :  { %2874 = vadd.xlane.f32.xlu0 %v2873_v8  ;;  %v2965_v8 = vld [vmem:[%s4707_s3 + $0x10] sm:$0xff] }
 0x689   :  { %2372 = vrot.lane.b32.xlu1 %v4176_v12, %s4001_s16 }
 0x68d   :  { %2538 = vrot.lane.b32.xlu1 %v4176_v12, %s4000_s15 }
 0x691   :  { %2708 = vrot.lane.b32.xlu1 %v4176_v12, %s3998_s30 }
 0x693   :  { %2201 = vrot.lane.b32.xlu0 %v4170_v11, %s3999_s14 }
 0x695   :  { %2878 = vrot.lane.b32.xlu1 %v4176_v12, %s3999_s14 }
 0x6b0   :  { %v501_v10 = vpop.xlane.xlu0 %500 }
 0x6b1   :  { %3896 = vrcp.f32 %v501_v10 }
 0x6b4   :  { %v672_v18 = vpop.xlane.xlu1 %671  ;;  %v1696_v12 = vpop.permute.xlu0 %1695 }
 0x6b5   :  { %3898 = vrcp.f32 %v672_v18 }
 0x6bb   :  { %v3897_v0 = vpop.eup %3896 }
 0x6bc   :  { %v503_v7 = vmul.f32 %v3897_v0, %v4389_v54  ;;  %v1015_v54 = vpop.xlane.xlu1 %1014 }
 0x6be   :  { %3603 = vmatmul.mubr.msk.f32.vlgmr.msra.gmra.mrb[6].mxu0 %vm251_vm2, %v503_v7 }
 0x6bf   :  { %v3899_v22 = vpop.eup %3898  ;;  %3611 = vmatpush3.msra.mxu0 %v4378_v41  ;;  %3612 = vmatprep.mubr.msk.f32.mxu0 %vm3990_vm1, %v3989_v57 }
 0x6c0   :  { %v674_v11 = vmul.f32 %v3899_v22, %v4393_v58  ;;  %3620 = vmatprep.subr.mxu0 %v3989_v57 }
 0x6c2   :  { %3613 = vmatmul.mubr.msk.f32.vlgmr.msra.gmra.mrb[8].mxu0 %vm251_vm2, %v674_v11 }
 0x6c3   :  { %3621 = vmatpush3.msra.mxu0 %v4380_v42  ;;  %3622 = vmatprep.mubr.msk.f32.mxu0 %vm3990_vm1, %v3989_v57 }
 0x6c4   :  { %3630 = vmatprep.subr.mxu0 %v3989_v57  ;;  %v1351_v26 = vpop.xlane.xlu1 %1350 }
 0x6c8   :  { %v2032_v34 = vpop.permute.xlu1 %2031 }
 0x6e5   :  { %v843_v24 = vpop.xlane.xlu0 %842 }
 0x6e6   :  { %3900 = vrcp.f32 %v843_v24 }
 0x6e7   :  { %3902 = vrcp.f32 %v1015_v54 }
 0x6e9   :  { %v1181_v41 = vpop.xlane.xlu0 %1180 }
 0x6ea   :  { %3904 = vrcp.f32 %v1181_v41 }
 0x6eb   :  { %3906 = vrcp.f32 %v1351_v26 }
 0x6f0   :  { %v3901_v58 = vpop.eup %3900 }
 0x6f1   :  { %v845_v28 = vmul.f32 %v3901_v58, %v4414_v14  ;;  %v3903_v30 = vpop.eup %3902 }
 0x6f2   :  { %v1017_v42 = vmul.f32 %v3903_v30, %v4398_v63 }
 0x6f3   :  { %3623 = vmatmul.mubr.msk.f32.vlgmr.msra.gmra.mrb[10].mxu0 %vm251_vm2, %v845_v28 }
 0x6f4   :  { %3631 = vmatpush3.msra.mxu0 %v4382_v43  ;;  %3632 = vmatprep.mubr.msk.f32.mxu0 %vm3990_vm1, %v3989_v57  ;;  %v3905_v33 = vpop.eup %3904 }
 0x6f5   :  { %v1521_v32 = vpop.xlane.xlu0 %1520  ;;  %3640 = vmatprep.subr.mxu0 %v3989_v57  ;;  %v1183_v43 = vmul.f32 %v3905_v33, %v4420_v20  ;;  %v3907_v14 = vpop.eup %3906 }
 0x6f6   :  { %3908 = vrcp.f32 %v1521_v32 }
 0x6f7   :  { %3633 = vmatmul.mubr.msk.f32.vlgmr.msra.gmra.mrb[12].mxu0 %vm251_vm2, %v1017_v42 }
 0x6f8   :  { %3641 = vmatpush3.msra.mxu0 %v4384_v44  ;;  %3642 = vmatprep.mubr.msk.f32.mxu0 %vm3990_vm1, %v3989_v57  ;;  %v1353_v44 = vmul.f32 %v3907_v14, %v4402_v2 }
 0x6f9   :  { %3650 = vmatprep.subr.mxu0 %v3989_v57  ;;  %v1858_v5 = vpop.xlane.xlu1 %1857 }
 0x6fa   :  { %v1692_v63 = vpop.xlane.xlu0 %1691 }
 0x6fb   :  { %3910 = vrcp.f32 %v1692_v63  ;;  %3643 = vmatmul.mubr.msk.f32.vlgmr.msra.gmra.mrb[14].mxu0 %vm251_vm2, %v1183_v43 }
 0x6fc   :  { %3651 = vmatpush3.msra.mxu0 %v4416_v16  ;;  %3652 = vmatprep.mubr.msk.f32.mxu0 %vm3990_vm1, %v3989_v57  ;;  %3912 = vrcp.f32 %v1858_v5 }
 0x6fd   :  { %3660 = vmatprep.subr.mxu0 %v3989_v57 }
 0x6fe   :  { %v2028_v35 = vpop.xlane.xlu0 %2027 }
 0x6ff   :  { %3653 = vmatmul.mubr.msk.f32.vlgmr.msra.gmra.mrb[16].mxu0 %vm251_vm2, %v1353_v44  ;;  %3914 = vrcp.f32 %v2028_v35 }
 0x700   :  { %v3909_v20 = vpop.eup %3908  ;;  %3661 = vmatpush3.msra.mxu0 %v4412_v13  ;;  %3662 = vmatprep.mubr.msk.f32.mxu0 %vm3990_vm1, %v3989_v57 }
 0x701   :  { %v1523_v15 = vmul.f32 %v3909_v20, %v4431_v17  ;;  %3670 = vmatprep.subr.mxu0 %v3989_v57  ;;  %v2369_v16 = vpop.xlane.xlu1 %2368 }
 0x702   :  { %v2198_v36 = vpop.xlane.xlu0 %2197 }
 0x703   :  { %3663 = vmatmul.mubr.msk.f32.vlgmr.msra.gmra.mrb[18].mxu0 %vm251_vm2, %v1523_v15  ;;  %3916 = vrcp.f32 %v2198_v36 }
 0x704   :  { %3671 = vmatpush3.msra.mxu0 %v1696_v12  ;;  %3672 = vmatprep.mubr.msk.f32.mxu0 %vm3990_vm1, %v3989_v57  ;;  %3918 = vrcp.f32 %v2369_v16 }
 0x705   :  { %v3911_v2 = vpop.eup %3910  ;;  %3680 = vmatprep.subr.mxu0 %v3989_v57  ;;  %v2705_v39 = vpop.xlane.xlu1 %2704 }
 0x706   :  { %v1694_v13 = vmul.f32 %v3911_v2, %v4439_v51  ;;  %v2535_v37 = vpop.xlane.xlu0 %2534  ;;  %v3913_v38 = vpop.eup %3912 }
 0x707   :  { %v1860_v40 = vmul.f32 %v3913_v38, %v4437_v27  ;;  %3920 = vrcp.f32 %v2535_v37 }
 0x708   :  { %3673 = vmatmul.mubr.msk.f32.vlgmr.msra.gmra.mrb[20].mxu0 %vm251_vm2, %v1694_v13  ;;  %3922 = vrcp.f32 %v2705_v39 }
 0x709   :  { %3681 = vmatpush3.msra.mxu0 %v4479_v9  ;;  %3682 = vmatprep.mubr.msk.f32.mxu0 %vm3990_vm1, %v3989_v57  ;;  %v3915_v19 = vpop.eup %3914  ;;  %v2373_v46 = vpop.permute.xlu1 %2372  ;;  %v2966_v9 = vld [vmem:[%s4707_s3 + $0x18] sm:$0xff] }
 0x70a   :  { %v2875_v45 = vpop.xlane.xlu0 %2874  ;;  %3690 = vmatprep.subr.mxu0 %v3989_v57  ;;  %v2030_v17 = vmul.f32 %v3915_v19, %v4445_v31  ;;  %v3807_v18 = vpack.c.bf16 %v2966_v9, %v2965_v8 }
 0x70b   :  { %3924 = vrcp.f32 %v2875_v45 }
 0x70c   :  { %3683 = vmatmul.mubr.msk.f32.vlgmr.msra.gmra.mrb[22].mxu0 %vm251_vm2, %v1860_v40 }
 0x70d   :  { %3691 = vmatpush3.msra.mxu0 %v2032_v34  ;;  %3692 = vmatprep.mubr.msk.f32.mxu0 %vm3990_vm1, %v3989_v57  ;;  %v3917_v48 = vpop.eup %3916  ;;  %v2539_v23 = vpop.permute.xlu1 %2538 }
 0x70e   :  { %v2202_v47 = vpop.permute.xlu0 %2201  ;;  %3700 = vmatprep.subr.mxu0 %v3989_v57  ;;  %v2200_v49 = vmul.f32 %v3917_v48, %v4449_v56  ;;  %v3919_v21 = vpop.eup %3918 }
 0x70f   :  { %v2371_v50 = vmul.f32 %v3919_v21, %v4451_v59 }
 0x710   :  { %3693 = vmatmul.mubr.msk.f32.vlgmr.msra.gmra.mrb[24].mxu0 %vm251_vm2, %v2030_v17 }
 0x711   :  { %3701 = vmatpush3.msra.mxu0 %v2202_v47  ;;  %3702 = vmatprep.mubr.msk.f32.mxu0 %vm3990_vm1, %v3989_v57  ;;  %v3921_v27 = vpop.eup %3920  ;;  %v2709_v51 = vpop.permute.xlu1 %2708 }
 0x712   :  { %3710 = vmatprep.subr.mxu0 %v3989_v57  ;;  %v2537_v25 = vmul.f32 %v3921_v27, %v4457_v62  ;;  %v3923_v52 = vpop.eup %3922 }
 0x713   :  { %v2707_v53 = vmul.f32 %v3923_v52, %v4459_v1  ;;  %v3935_v52 = vld [vmem:[%s4704_s0] sm:$0xff] }
 0x714   :  { %3703 = vmatmul.mubr.msk.f32.vlgmr.msra.gmra.mrb[26].mxu0 %vm251_vm2, %v2200_v49  ;;  %v3454_v49 = vld [vmem:[%s4708_s4] ss:$0 sm:$0xff] }
 0x715   :  { %3711 = vmatpush3.msra.mxu0 %v2373_v46  ;;  %3712 = vmatprep.mubr.msk.f32.mxu0 %vm3990_vm1, %v3989_v57  ;;  %v3925_v55 = vpop.eup %3924  ;;  %v2879_v31 = vpop.permute.xlu1 %2878 }
 0x716   :  { %3720 = vmatprep.subr.mxu0 %v3989_v57  ;;  %v2877_v29 = vmul.f32 %v3925_v55, %v4465_v6 }
 0x718   :  { %3713 = vmatmul.mubr.msk.f32.vlgmr.msra.gmra.mrb[28].mxu0 %vm251_vm2, %v2371_v50 }
 0x719   :  { %3721 = vmatpush3.msra.mxu0 %v2539_v23  ;;  %3722 = vmatprep.mubr.msk.f32.mxu0 %vm3990_vm1, %v3989_v57 }
 0x71a   :  { %3730 = vmatprep.subr.mxu0 %v3989_v57 }
 0x71c   :  { %3723 = vmatmul.mubr.msk.f32.vlgmr.msra.gmra.mrb[30].mxu0 %vm251_vm2, %v2537_v25  ;;  %v3934_v25 = vld [vmem:[%s4704_s0 + $0x8] sm:$0xff] }
 0x71d   :  { %3731 = vmatpush3.msra.mxu0 %v2709_v51  ;;  %3732 = vmatprep.mubr.msk.f32.mxu0 %vm3990_vm1, %v3989_v57 }
 0x71e   :  { %3740 = vmatprep.subr.mxu0 %v3989_v57 }
 0x720   :  { %3733 = vmatmul.mubr.msk.f32.vlgmr.msra.gmra.mrb[32].mxu0 %vm251_vm2, %v2707_v53 }
 0x721   :  { %3741 = vmatpush3.msra.mxu0 %v2879_v31  ;;  %3742 = vmatprep.mubr.msk.f32.mxu0 %vm3990_vm1, %v3989_v57  ;;  %v2963_v57 = vld [vmem:[%s4707_s3] sm:$0xff] }
 0x722   :  { %v3803_v6 = vpack.c.bf16 %v2964_v3, %v2963_v57 }
 0x724   :  { %3743 = vmatmul.mubr.msk.f32.vlgmr.msra.gmra.mrb[34].mxu0 %vm251_vm2, %v2877_v29  ;;  %3804 = vmatprep.subr.bf16.mxu1 %v3803_v6 }
 0x725   :  { %3806 = vmatpush3.bf16.msra.mxu1 %v3803_v6 }
 0x726   :  { %3808 = vmatprep.subr.bf16.mxu1 %v3807_v18 }
 0x729   :  { %3810 = vmatpush3.bf16.msra.mxu1 %v3807_v18 }
 0x791   :  { %v576_v56 = vpop.f32.mrb[6].mxu0 }
 0x792   :  { %581 = vrot.lane.b32.xlu1 %v576_v56, %s3988_s19  ;;  %v3604_v59 = vpop.f32.mrb[7].mxu0 }
 0x795   :  { %v747_v60 = vpop.f32.mrb[8].mxu0 }
 0x796   :  { %752 = vrot.lane.b32.xlu1 %v747_v60, %s4002_s17  ;;  %v3614_v61 = vpop.f32.mrb[9].mxu0 }
 0x797   :  { %v3936_v61 = vld [vmem:[%s4704_s0 + $0x10] sm:$0xff] }
 0x7c6   :  { %v918_v62 = vpop.f32.mrb[10].mxu0 }
 0x7c7   :  { %923 = vrot.lane.b32.xlu1 %v918_v62, %s4003_s20  ;;  %v3624_v1 = vpop.f32.mrb[11].mxu0 }
 0x7c8   :  { %v3937_v1 = vld [vmem:[%s4704_s0 + $0x18] sm:$0xff] }
 0x7ca   :  { %v1090_v4 = vpop.f32.mrb[12].mxu0 }
 0x7cb   :  { %1094 = vst.msk [vmem:[#allocation2 + $0x8] sm:$0xff] %vm251_vm2, %v1090_v4  ;;  %v3634_v10 = vpop.f32.mrb[13].mxu0 }
 0x7ce   :  { %v1256_v0 = vpop.f32.mrb[14].mxu0 }
 0x7cf   :  { %1261 = vrot.lane.b32.xlu0 %v1256_v0, %s3988_s19  ;;  %v3644_v7 = vpop.f32.mrb[15].mxu0 }
 0x7d2   :  { %v1426_v22 = vpop.f32.mrb[16].mxu0 }
 0x7d3   :  { %1431 = vrot.lane.b32.xlu0 %v1426_v22, %s4002_s17  ;;  %v3654_v11 = vpop.f32.mrb[17].mxu0 }
 0x7d6   :  { %v1596_v12 = vpop.f32.mrb[18].mxu0 }
 0x7d7   :  { %1601 = vrot.lane.b32.xlu1 %v1596_v12, %s4003_s20  ;;  %v3664_v54 = vpop.f32.mrb[19].mxu0 }
 0x7db   :  { %v1767_v24 = vpop.f32.mrb[20].mxu0 }
 0x7dc   :  { %1771 = vst.msk [vmem:[#allocation2 + $0x10] sm:$0xff] %vm251_vm2, %v1767_v24  ;;  %v3674_v41 = vpop.f32.mrb[21].mxu0 }
 0x7dd   :  { %v3149_v41 = vld [vmem:[#allocation3] sm:$0xff] }
 0x7df   :  { %v1933_v26 = vpop.f32.mrb[22].mxu0 }
 0x7e0   :  { %1938 = vrot.lane.b32.xlu0 %v1933_v26, %s3988_s19  ;;  %v3684_v58 = vpop.f32.mrb[23].mxu0  ;;  %v3150_v26 = vld [vmem:[#allocation3 + $0x8] sm:$0xff] }
 0x7e3   :  { %v2103_v28 = vpop.f32.mrb[24].mxu0 }
 0x7e4   :  { %2108 = vrot.lane.b32.xlu1 %v2103_v28, %s4002_s17  ;;  %v3694_v30 = vpop.f32.mrb[25].mxu0  ;;  %v3811_v28 = vpack.c.bf16 %v3150_v26, %v3149_v41 }
 0x7e5   :  { %v3151_v30 = vld [vmem:[#allocation3 + $0x10] sm:$0xff] }
 0x7e6   :  { %3812 = vmatprep.subr.bf16.mxu0 %v3811_v28 }
 0x7e7   :  { %v2273_v42 = vpop.f32.mrb[26].mxu0  ;;  %3814 = vmatpush3.bf16.msra.mxu0 %v3811_v28 }
 0x7e8   :  { %2278 = vrot.lane.b32.xlu1 %v2273_v42, %s4003_s20  ;;  %v3704_v32 = vpop.f32.mrb[27].mxu0  ;;  %v3152_v42 = vld [vmem:[#allocation3 + $0x18] sm:$0xff] }
 0x7eb   :  { %v2444_v33 = vpop.f32.mrb[28].mxu0 }
 0x7ec   :  { %2448 = vst.msk [vmem:[#allocation2 + $0x18] sm:$0xff] %vm251_vm2, %v2444_v33  ;;  %v3714_v34 = vpop.f32.mrb[29].mxu0  ;;  %v3815_v33 = vpack.c.bf16 %v3152_v42, %v3151_v30 }
 0x7ee   :  { %3816 = vmatprep.subr.bf16.mxu0 %v3815_v33 }
 0x7ef   :  { %v2610_v43 = vpop.f32.mrb[30].mxu0  ;;  %3818 = vmatpush3.bf16.msra.mxu0 %v3815_v33 }
 0x7f0   :  { %2615 = vrot.lane.b32.xlu0 %v2610_v43, %s3988_s19  ;;  %v3724_v14 = vpop.f32.mrb[31].mxu0 }
 0x7f3   :  { %v2780_v5 = vpop.f32.mrb[32].mxu0 }
 0x7f4   :  { %2785 = vrot.lane.b32.xlu0 %v2780_v5, %s4002_s17  ;;  %v3734_v63 = vpop.f32.mrb[33].mxu0 }
 0x7f7   :  { %v2950_v44 = vpop.f32.mrb[34].mxu0 }
 0x7f8   :  { %2955 = vrot.lane.b32.xlu1 %v2950_v44, %s4003_s20  ;;  %v3744_v35 = vpop.f32.mrb[35].mxu0 }
 0x7f9   :  { %v3261_v35 = vld [vmem:[%s4715_s11] sm:$0xff] }
 0x804   :  { %v582_v20 = vpop.permute.xlu1 %581 }
 0x805   :  { %585 = vst.msk [vmem:[#allocation2] sm:$0xff] %vm584_vm3, %v582_v20  ;;  %v3262_v20 = vld [vmem:[%s4715_s11 + $0x8] sm:$0xff] }
 0x808   :  { %v753_v15 = vpop.permute.xlu1 %752 }
 0x809   :  { %756 = vst.msk [vmem:[#allocation2] sm:$0xff] %vm755_vm4, %v753_v15  ;;  %v3263_v15 = vld [vmem:[%s4715_s11 + $0x10] sm:$0xff] }
 0x839   :  { %v924_v16 = vpop.permute.xlu1 %923 }
 0x83a   :  { %927 = vst.msk [vmem:[#allocation2] sm:$0xff] %vm926_vm5, %v924_v16  ;;  %v3819_v16 = vpack.c.bf16 %v3262_v20, %v3261_v35 }
 0x83c   :  { %3820 = vmatprep.subr.bf16.mxu1 %v3819_v16 }
 0x841   :  { %v1262_v36 = vpop.permute.xlu0 %1261  ;;  %v2959_v2 = vld [vmem:[#allocation2] sm:$0xff] }
 0x842   :  { %1264 = vst.msk [vmem:[#allocation2 + $0x8] sm:$0xff] %vm584_vm3, %v1262_v36  ;;  %3753 = vmatprep.mubr.msk.f32.mxu1 %vm65_vm0, %v2959_v2  ;;  %v3264_v36 = vld [vmem:[%s4715_s11 + $0x18] sm:$0xff] }
 0x843   :  { %v3823_v2 = vpack.c.bf16 %v3264_v36, %v3263_v15 }
 0x845   :  { %v1432_v13 = vpop.permute.xlu0 %1431 }
 0x846   :  { %1434 = vst.msk [vmem:[#allocation2 + $0x8] sm:$0xff] %vm755_vm4, %v1432_v13  ;;  %v3265_v13 = vld [vmem:[%s4715_s11 + $0x20] sm:$0xff] }
 0x849   :  { %v1602_v37 = vpop.permute.xlu1 %1601 }
 0x84a   :  { %1604 = vst.msk [vmem:[#allocation2 + $0x8] sm:$0xff] %vm926_vm5, %v1602_v37  ;;  %v3266_v37 = vld [vmem:[%s4715_s11 + $0x28] sm:$0xff] }
 0x851   :  { %v2960_v38 = vld [vmem:[#allocation2 + $0x8] sm:$0xff] }
 0x852   :  { %v1939_v39 = vpop.permute.xlu0 %1938  ;;  %3754 = vmatmul.mubr.msk.f32.vlgmr.msra.gmra.mrb[32].mxu1 %vm65_vm0, %v2960_v38  ;;  %v3827_v38 = vpack.c.bf16 %v3266_v37, %v3265_v13 }
 0x853   :  { %1941 = vst.msk [vmem:[#allocation2 + $0x10] sm:$0xff] %vm584_vm3, %v1939_v39  ;;  %3822 = vmatpush3.bf16.msra.mxu1 %v3819_v16 }
 0x854   :  { %3824 = vmatprep.subr.bf16.mxu1 %v3823_v2 }
 0x856   :  { %v2109_v40 = vpop.permute.xlu1 %2108 }
 0x857   :  { %2111 = vst.msk [vmem:[#allocation2 + $0x10] sm:$0xff] %vm755_vm4, %v2109_v40  ;;  %3826 = vmatpush3.bf16.msra.mxu1 %v3823_v2 }
 0x858   :  { %3828 = vmatprep.subr.bf16.mxu1 %v3827_v38 }
 0x85a   :  { %v2279_v45 = vpop.permute.xlu1 %2278 }
 0x85b   :  { %2281 = vst.msk [vmem:[#allocation2 + $0x10] sm:$0xff] %vm926_vm5, %v2279_v45  ;;  %3830 = vmatpush3.bf16.msra.mxu1 %v3827_v38 }
 0x862   :  { %v2616_v19 = vpop.permute.xlu0 %2615  ;;  %v2961_v17 = vld [vmem:[#allocation2 + $0x10] sm:$0xff] }
 0x863   :  { %2618 = vst.msk [vmem:[#allocation2 + $0x18] sm:$0xff] %vm584_vm3, %v2616_v19  ;;  %3756 = vmatprep.mubr.msk.f32.mxu1 %vm65_vm0, %v2961_v17 }
 0x866   :  { %v2786_v46 = vpop.permute.xlu0 %2785 }
 0x867   :  { %2788 = vst.msk [vmem:[#allocation2 + $0x18] sm:$0xff] %vm755_vm4, %v2786_v46 }
 0x86a   :  { %v2956_v47 = vpop.permute.xlu1 %2955 }
 0x86b   :  { %2958 = vst.msk [vmem:[#allocation2 + $0x18] sm:$0xff] %vm926_vm5, %v2956_v47 }
 0x872   :  { %v2962_v48 = vld [vmem:[#allocation2 + $0x18] sm:$0xff] }
 0x873   :  { %3757 = vmatmul.mubr.msk.f32.gmra.mrb[34].mxu1 %vm65_vm0, %v2962_v48  ;;  %v3459_v48 = vld [vmem:[%s4711_s7] ss:$0 sm:$0xff] }
 0x925   :  { %v3755_v21 = vpop.f32.mrb[32].mxu1 }
 0x926   :  { %v3058_v23 = vadd.f32 %v3755_v21, %v3454_v49  ;;  %v3052_v50 = vpop.f32.mrb[33].mxu1 }
 0x927   :  { %v3053_v27 = vadd.f32 %v3454_v49, %v3052_v50  ;;  %v3460_v50 = vld [vmem:[%s4712_s8] ss:$0 sm:$0xff] }
 0x928   :  { %v4608_v51 = vadd.f32 %v3934_v25, %v3058_v23 }
 0x929   :  { %v4613_v53 = vadd.f32 %v3935_v52, %v3053_v27 }
 0x92a   :  { %v3080_v55 = vsel %vm65_vm0, %v4608_v51, 0.0 }
 0x92b   :  { %3081 = vadd.xlane.f32.xlu1 %v3080_v55  ;;  %v3077_v31 = vsel %vm65_vm0, %v4613_v53, 0.0 }
 0x92c   :  { %3078 = vadd.xlane.f32.xlu0 %v3077_v31 }
 0x946   :  { %v3758_v29 = vpop.f32.mrb[34].mxu1 }
 0x947   :  { %v3062_v56 = vpop.f32.mrb[35].mxu1  ;;  %v3068_v59 = vadd.f32 %v3758_v29, %v3454_v49 }
 0x948   :  { %v3063_v60 = vadd.f32 %v3454_v49, %v3062_v56 }
 0x949   :  { %v4627_v57 = vadd.f32 %v3937_v1, %v3068_v59 }
 0x94a   :  { %v4622_v62 = vadd.f32 %v3936_v61, %v3063_v60 }
 0x94b   :  { %v3086_v4 = vsel %vm65_vm0, %v4627_v57, 0.0 }
 0x94c   :  { %v3083_v3 = vsel %vm65_vm0, %v4622_v62, 0.0 }
 0x94d   :  { %3084 = vadd.xlane.f32.xlu0 %v3083_v3 }
 0x951   :  { %3087 = vadd.xlane.f32.xlu0 %v3086_v4 }
 0x9b8   :  { %v3082_v6 = vpop.xlane.xlu1 %3081 }
 0x9b9   :  { %v3090_v8 = vmul.f32 0.03125, %v3082_v6  ;;  %v3079_v9 = vpop.xlane.xlu0 %3078 }
 0x9ba   :  { %v3089_v10 = vmul.f32 0.03125, %v3079_v9 }
 0x9bb   :  { %v3094_v18 = vsub.f32 %v4608_v51, %v3090_v8 }
 0x9bc   :  { %v3093_v0 = vsub.f32 %v4613_v53, %v3089_v10 }
 0x9bd   :  { %v3098_v7 = vmul.f32 %v3094_v18, %v3094_v18 }
 0x9be   :  { %v3097_v22 = vmul.f32 %v3093_v0, %v3093_v0 }
 0x9bf   :  { %v3104_v11 = vsel %vm65_vm0, %v3098_v7, 0.0  ;;  %v3268_v7 = vld [vmem:[%s4715_s11 + $0x38] sm:$0xff] }
 0x9c0   :  { %3105 = vadd.xlane.f32.xlu1 %v3104_v11  ;;  %v3101_v12 = vsel %vm65_vm0, %v3097_v22, 0.0  ;;  %v3461_v11 = vld [vmem:[%s4714_s10] ss:$0 sm:$0xff]  ;;  %s4004_s10 = smov [#allocation6]  }
 0x9c1   :  { %3102 = vadd.xlane.f32.xlu0 %v3101_v12  ;;  %s3387_s30 = sshll.u32 %s4004_s10, 4  ;;  %s3388_s30 = int_to_ptr.vmem [resolvable:$true] %s3387_s30 }
 0x9c2   :  { %p3965_p9 = scmp.lt.s32.totalorder %s3388_s30, %s3388_s30 }
 0x9da   :  { %v3085_v54 = vpop.xlane.xlu0 %3084 }
 0x9db   :  { %v3091_v24 = vmul.f32 0.03125, %v3085_v54 }
 0x9dd   :  { %v3095_v58 = vsub.f32 %v4622_v62, %v3091_v24 }
 0x9de   :  { %v3088_v32 = vpop.xlane.xlu0 %3087 }
 0x9df   :  { %v3092_v34 = vmul.f32 0.03125, %v3088_v32  ;;  %v3099_v43 = vmul.f32 %v3095_v58, %v3095_v58 }
 0x9e1   :  { %v3096_v14 = vsub.f32 %v4627_v57, %v3092_v34  ;;  %v3107_v5 = vsel %vm65_vm0, %v3099_v43, 0.0  ;;  %v3466_v43 = vld [vmem:[%s4716_s12] ss:$0 sm:$0xff]  ;;  %s3960_s12 = scalar_lea.vmem %s3388_s30, 512 }
 0x9e2   :  { %3108 = vadd.xlane.f32.xlu0 %v3107_v5  ;;  %p3961_p8 = scmp.ne.s32.totalorder %s3388_s30, %s3960_s12  ;;  %p3966_p10 = scmp.lt.s32.totalorder %s3960_s12, %s3960_s12 }
 0x9e3   :  { %v3100_v63 = vmul.f32 %v3096_v14, %v3096_v14 }
 0x9e4   :  { %p3967_p11 = por %p3966_p10, %p3965_p9 }
 0x9e5   :  { %v3110_v44 = vsel %vm65_vm0, %v3100_v63, 0.0 }
 0x9e6   :  { %3111 = vadd.xlane.f32.xlu1 %v3110_v44  ;;  %p3968_p12 = pnand %p3967_p11, %p3961_p8 }
 0xa4d   :  { %v3106_v39 = vpop.xlane.xlu1 %3105 }
 0xa4e   :  { %v3114_v40 = vmul.f32 0.03125, %v3106_v39  ;;  %v3103_v45 = vpop.xlane.xlu0 %3102 }
 0xa4f   :  { %v3113_v19 = vmul.f32 0.03125, %v3103_v45 }
 0xa50   :  { %v3118_v17 = vadd.f32 1e-05, %v3114_v40 }
 0xa51   :  { %v3117_v46 = vadd.f32 1e-05, %v3113_v19 }
 0xa52   :  { %3926 = vrsqrt.f32 %v3118_v17 }
 0xa53   :  { %3928 = vrsqrt.f32 %v3117_v46 }
 0xa5c   :  { %v3927_v47 = vpop.eup %3926 }
 0xa5d   :  { %v3929_v49 = vpop.eup %3928  ;;  %v3126_v21 = vmul.f32 %v3927_v47, %v3094_v18 }
 0xa5e   :  { %v3125_v23 = vmul.f32 %v3929_v49, %v3093_v0  ;;  %v3267_v0 = vld [vmem:[%s4715_s11 + $0x30] sm:$0xff] }
 0xa5f   :  { %v3136_v27 = vmul.f32 %v3459_v48, %v3126_v21  ;;  %v3831_v22 = vpack.c.bf16 %v3268_v7, %v3267_v0 }
 0xa60   :  { %v3135_v25 = vmul.f32 %v3459_v48, %v3125_v23 }
 0xa61   :  { %v3146_v55 = vadd.f32 %v3460_v50, %v3136_v27  ;;  %3832 = vmatprep.subr.bf16.mxu1 %v3831_v22 }
 0xa62   :  { %v3145_v52 = vadd.f32 %v3460_v50, %v3135_v25  ;;  %3834 = vmatpush3.bf16.msra.mxu1 %v3831_v22 }
 0xa64   :  { %3767 = vmatprep.mubr.msk.f32.mxu0 %vm65_vm0, %v3145_v52 }
 0xa65   :  { %3768 = vmatmul.mubr.msk.f32.vlgmr.msra.gmra.mrb[36].mxu0 %vm65_vm0, %v3146_v55 }
 0xa6f   :  { %v3109_v31 = vpop.xlane.xlu0 %3108 }
 0xa70   :  { %v3115_v29 = vmul.f32 0.03125, %v3109_v31 }
 0xa72   :  { %v3119_v56 = vadd.f32 1e-05, %v3115_v29 }
 0xa73   :  { %v3112_v59 = vpop.xlane.xlu1 %3111 }
 0xa74   :  { %3930 = vrsqrt.f32 %v3119_v56  ;;  %v3116_v60 = vmul.f32 0.03125, %v3112_v59 }
 0xa76   :  { %v3120_v61 = vadd.f32 1e-05, %v3116_v60 }
 0xa78   :  { %3932 = vrsqrt.f32 %v3120_v61 }
 0xa7e   :  { %v3931_v1 = vpop.eup %3930 }
 0xa7f   :  { %v3127_v3 = vmul.f32 %v3931_v1, %v3095_v58 }
 0xa81   :  { %v3137_v4 = vmul.f32 %v3459_v48, %v3127_v3 }
 0xa82   :  { %v3933_v6 = vpop.eup %3932 }
 0xa83   :  { %v3147_v8 = vadd.f32 %v3460_v50, %v3137_v4  ;;  %v3128_v9 = vmul.f32 %v3933_v6, %v3096_v14 }
 0xa85   :  { %3770 = vmatprep.mubr.msk.f32.mxu0 %vm65_vm0, %v3147_v8  ;;  %v3138_v10 = vmul.f32 %v3459_v48, %v3128_v9 }
 0xa87   :  { %v3148_v18 = vadd.f32 %v3460_v50, %v3138_v10 }
 0xa89   :  { %3771 = vmatmul.mubr.msk.f32.gmra.mrb[38].mxu0 %vm65_vm0, %v3148_v18 }
 0xb38   :  { %v3769_v12 = vpop.f32.mrb[36].mxu0 }
 0xb39   :  { %v3244_v54 = vadd.f32 %v3769_v12, %v3461_v11  ;;  %v3238_v24 = vpop.f32.mrb[37].mxu0 }
 0xb3a   :  { %v3239_v41 = vadd.f32 %v3461_v11, %v3238_v24 }
 0xb3b   :  { %v3258_v58 = vmax.f32 %v3244_v54, 0.0 }
 0xb3c   :  { %v3257_v26 = vmax.f32 %v3239_v41, 0.0 }
 0xb3e   :  { %3789 = vmatprep.mubr.msk.f32.mxu1 %vm3276_vm6, %v3257_v26 }
 0xb3f   :  { %3790 = vmatmul.mubr.msk.f32.vlgmr.msra.gmra.mrb[36].mxu1 %vm3276_vm6, %v3258_v58 }
 0xb5c   :  { %v3772_v28 = vpop.f32.mrb[38].mxu0 }
 0xb5d   :  { %v3254_v30 = vadd.f32 %v3772_v28, %v3461_v11  ;;  %v3248_v42 = vpop.f32.mrb[39].mxu0 }
 0xb5e   :  { %v3249_v32 = vadd.f32 %v3461_v11, %v3248_v42 }
 0xb5f   :  { %v3260_v34 = vmax.f32 %v3254_v30, 0.0 }
 0xb60   :  { %v3259_v33 = vmax.f32 %v3249_v32, 0.0 }
 0xb62   :  { %3792 = vmatprep.mubr.msk.f32.mxu1 %vm3276_vm6, %v3259_v33 }
 0xb63   :  { %3793 = vmatmul.mubr.msk.f32.gmra.mrb[38].mxu1 %vm3276_vm6, %v3260_v34 }
 0xc12   :  { %v3791_v14 = vpop.f32.mrb[36].mxu1 }
 0xc13   :  { %v3361_v5 = vadd.f32 %v3791_v14, %v3466_v43  ;;  %v3355_v63 = vpop.f32.mrb[37].mxu1 }
 0xc14   :  { %v3356_v44 = vadd.f32 %v3466_v43, %v3355_v63 }
 0xc15   :  { %v3375_v35 = vadd.f32 %v3361_v5, %v4608_v51 }
 0xc16   :  { %v3374_v20 = vadd.f32 %v3356_v44, %v4613_v53 }
 0xc17   :  { %3379 = vst.msk [vmem:[#allocation6 + $0x8] sm:$0xff] %vm65_vm0, %v3375_v35 }
 0xc18   :  { %3378 = vst.msk [vmem:[#allocation6] sm:$0xff] %vm65_vm0, %v3374_v20 }
 0xc36   :  { %v3794_v15 = vpop.f32.mrb[38].mxu1 }
 0xc37   :  { %v3371_v16 = vadd.f32 %v3794_v15, %v3466_v43  ;;  %v3365_v36 = vpop.f32.mrb[39].mxu1 }
 0xc38   :  { %v3366_v2 = vadd.f32 %v3466_v43, %v3365_v36 }
 0xc39   :  { %v3377_v13 = vadd.f32 %v3371_v16, %v4627_v57 }
 0xc3a   :  { %v3376_v37 = vadd.f32 %v3366_v2, %v4622_v62 }
 0xc3b   :  { %3381 = vst.msk [vmem:[#allocation6 + $0x18] sm:$0xff] %vm65_vm0, %v3377_v13 }
 0xc3c   :  { %3380 = vst.msk [vmem:[#allocation6 + $0x10] sm:$0xff] %vm65_vm0, %v3376_v37 }
 0xc3d   :  { %3971 = shalt.err (!%p3968_p12)
}
 0xc3e   :  { %s3972_s15 = scalar_lea.hbm %s4717_s13, 512 }
 0xc3f   :  { %p3973_p13 = scmp.ne.s32.totalorder %s4717_s13, %s3972_s15  ;;  %p3976_p0 = scmp.lt.u32.totalorder %s3972_s15, %s4717_s13 }
 0xc41   :  { %p3978_p1 = pnand %p3976_p0, %p3973_p13 }
 0xc43   :  { %3981 = shalt.err (!%p3978_p1)
}
 0xc44   :  { %3393 = dma.vmem_to_hbm [thread:$0]  %s3388_s30, 512, %s4717_s13, [#allocation5], %s3987_s18, %s3987_s18, %s3988_s19  }
 0xc45   :  { %3984 = dma.done.wait [#allocation5], 512  }
 0xc46   :  { %3985 = vsyncadd [#allocation5], 4294966784 }
 0xc47   :  { %3397 = vsyncpa [#allocation4], 1 }
 0xc48   :  { %3398 = vsyncpa [#allocation5], 1 }

</bundles_post_ra>
